<compile_context>
chip_gen: v5e
topology: v5e:2x2
jax: 0.10.0
libtpu: 0.0.40
codegen_flags: <defaults>
</compile_context>

<pallas_src>
import functools
import math

import jax
import jax.numpy as jnp
from jax import lax
from jax.experimental import pallas as pl
from jax.experimental.pallas import tpu as pltpu


def _erf(x):
    # TODO(synk): exact torch.erf; Abramowitz-Stegun 7.1.26 (|err| <= 1.5e-7, ~f32 eps)
    # is used because lax.erf may not have a Mosaic lowering; only exp/mul/add/where.
    # (pl.reciprocal(..., approx=True) was considered for the divide but kept exact to
    #  preserve tight numerical fidelity; the transform runs once per token tile anyway.)
    a1, a2, a3, a4, a5 = (0.254829592, -0.284496736, 1.421413741,
                          -1.453152027, 1.061405429)
    p = 0.3275911
    s = jnp.where(x >= 0.0, 1.0, -1.0)
    ax = jnp.abs(x)
    t = 1.0 / (1.0 + p * ax)
    poly = ((((a5 * t + a4) * t + a3) * t + a2) * t + a1) * t
    return s * (1.0 - poly * jnp.exp(-(ax * ax)))


def _gelu(x):
    # x * 0.5 * (1 + erf(x / sqrt(2)))  -- the exact (non-tanh) gelu from the module.
    return x * 0.5 * (1.0 + _erf(x * (1.0 / math.sqrt(2.0))))


def _layernorm(x, gamma, beta, eps=1e-5):
    # NOTE: garbage rows in a boundary-padded token tile may hit var=0 -> rsqrt(eps);
    # harmless because those rows are masked off on the output write.
    mu = jnp.mean(x, axis=-1, keepdims=True)
    xc = x - mu
    var = jnp.mean(xc * xc, axis=-1, keepdims=True)
    return xc * lax.rsqrt(var + eps) * gamma + beta


def _lm_head_kernel(x_ref, m_ref, w0_ref, b0_ref, g0_ref, be0_ref,
                    w1_ref, b1_ref, g1_ref, be1_ref, mt_ref,
                    e_ref, bias_ref, out_ref, h_scr, *, tv):
    j = pl.program_id(1)

    # Compute the transformed hidden states once per token tile (vocab tile j == 0)
    # and keep them in a bf16 VMEM scratch for all vocab tiles of this token tile.
    @pl.when(j == 0)
    def _():
        x = x_ref[...]                                               # (TN, Dm) f32
        # transform0: Linear(Dm, Dm) -> gelu -> LayerNorm   (f32 matmul, f32 acc)
        h = jnp.dot(x, w0_ref[...],
                    preferred_element_type=jnp.float32) + b0_ref[...]
        h = _layernorm(_gelu(h), g0_ref[...], be0_ref[...])
        # transform: Linear(Dm, De) -> gelu -> LayerNorm
        h = jnp.dot(h, w1_ref[...],
                    preferred_element_type=jnp.float32) + b1_ref[...]
        h = _layernorm(_gelu(h), g1_ref[...], be1_ref[...])
        # meter embedding lookup as a one-hot matmul (forward of nn.Embedding;
        # padding_idx only affects gradients, forward is a plain row lookup).
        cond = m_ref[...]                                            # (TN, 1) int32
        mv = mt_ref.shape[0]
        row = lax.broadcasted_iota(jnp.int32, (cond.shape[0], mv), 1)
        onehot = (row == cond).astype(jnp.float32)                   # (TN, MV)
        me = jnp.dot(onehot, mt_ref[...],
                     preferred_element_type=jnp.float32)             # (TN, De)
        h_scr[...] = (h - me).astype(h_scr.dtype)                    # bf16 scratch

    # Decoder tile: logits[i, j] = h @ E[:, j] + bias[j]
    #   bf16 x bf16 operands, f32 accumulation on the MXU.
    logits = jnp.dot(h_scr[...], e_ref[...],
                     preferred_element_type=jnp.float32)             # (TN, TV) f32
    start = pl.multiple_of(j * tv, 128)
    out_ref[...] = logits + bias_ref[:, pl.ds(start, tv)]


def lm_prediction_head(hidden_states, meter_cond,
                       w0, b0, g0, be0, w1, b1, g1, be1,
                       meter_table, emb, dec_bias,
                       *, tn=256, tv=1024):
    """Forward of LMPredictionHead.

    hidden_states: (B, T, model_dim) f32.  meter_cond: (B, T) int.
    w0/w1 are pre-transposed to (in, out) layout (== torch weight.T).
    emb is the tied decoder weight (vocab, emb_dim); dec_bias is (vocab,).
    """
    B, T, Dm = hidden_states.shape
    De = w1.shape[1]
    V = emb.shape[0]
    MV = meter_table.shape[0]
    N = B * T

    f32 = jnp.float32
    bf16 = jnp.bfloat16
    x = hidden_states.reshape(N, Dm).astype(f32)
    m = meter_cond.reshape(N, 1).astype(jnp.int32)

    # Token tile: sublane multiple, no larger than the rounded-up token count.
    tn = max(8, min(tn, pl.cdiv(N, 8) * 8))
    tn = (tn // 8) * 8
    # Vocab tile: always a multiple of 128 (lane-dense output; aligned bias slices).
    tv = max(128, min(tv, pl.cdiv(V, 128) * 128))
    tv = (tv // 128) * 128

    grid = (pl.cdiv(N, tn), pl.cdiv(V, tv))

    # Decoder weight pre-transposed to (De, V) and cast to bf16 (MXU-native operands,
    # half the HBM/VMEM traffic for the streamed tiles); accumulation stays f32 in-kernel.
    e_t = emb.T.astype(bf16)
    # Decoder bias stays fully resident; pad (bias only, tiny) so in-kernel pl.ds slices
    # of width tv are always in range.
    v_pad = grid[1] * tv
    bias = dec_bias.reshape(1, V).astype(f32)
    if v_pad != V:
        bias = jnp.pad(bias, ((0, 0), (0, v_pad - V)))

    args = (
        x, m,
        w0.astype(f32), b0.reshape(1, -1).astype(f32),
        g0.reshape(1, -1).astype(f32), be0.reshape(1, -1).astype(f32),
        w1.astype(f32), b1.reshape(1, -1).astype(f32),
        g1.reshape(1, -1).astype(f32), be1.reshape(1, -1).astype(f32),
        meter_table.astype(f32),
        e_t, bias,
    )

    def build(single_buffer):
        def res_spec(shape):
            # Constant index_map -> VMEM-resident across the whole grid. Single-buffer
            # it (halves its VMEM footprint; matters on v7x's 64 MiB VMEM) when supported.
            if single_buffer:
                return pl.BlockSpec(shape, lambda i, j: (0, 0),
                                    pipeline_mode=pl.Buffered(1))
            return pl.BlockSpec(shape, lambda i, j: (0, 0))

        return pl.pallas_call(
            functools.partial(_lm_head_kernel, tv=tv),
            grid=grid,
            in_specs=[
                pl.BlockSpec((tn, Dm), lambda i, j: (i, 0)),   # x           (streams over i)
                pl.BlockSpec((tn, 1),  lambda i, j: (i, 0)),   # meter_cond  (streams over i)
                res_spec((Dm, Dm)),                            # W0          (resident)
                res_spec((1, Dm)),                             # b0
                res_spec((1, Dm)),                             # LN0 gamma
                res_spec((1, Dm)),                             # LN0 beta
                res_spec((Dm, De)),                            # W1          (resident)
                res_spec((1, De)),                             # b1
                res_spec((1, De)),                             # LN1 gamma
                res_spec((1, De)),                             # LN1 beta
                res_spec((MV, De)),                            # meter table (resident)
                pl.BlockSpec((De, tv), lambda i, j: (0, j)),   # decoder weight tile (bf16)
                res_spec((1, v_pad)),                          # decoder bias (resident)
            ],
            out_specs=pl.BlockSpec((tn, tv), lambda i, j: (i, j)),
            out_shape=jax.ShapeDtypeStruct((N, V), f32),
            scratch_shapes=[pltpu.VMEM((tn, De), bf16)],
            compiler_params=pltpu.CompilerParams(
                dimension_semantics=("parallel", "arbitrary"),
                vmem_limit_bytes=64 * 1024 * 1024),
        )

    def run(single_buffer):
        out = build(single_buffer)(*args)
        return jax.block_until_ready(out)

    try:
        out = run(single_buffer=True)
    except Exception:
        # pipeline_mode=pl.Buffered(1) not supported by this jax/libtpu combo:
        # fall back to default double-buffering for the resident params.
        out = run(single_buffer=False)

    # No padding was added, so no (N, V) slice copy: this reshape is metadata only.
    return out.reshape(B, T, V)


if __name__ == "__main__":
    key = jax.random.PRNGKey(0)
    keys = jax.random.split(key, 13)

    # Small shapes consistent with the module.
    B, T = 2, 8            # batch, seq
    Dm, De = 32, 64        # model_dim, embedding dim
    V = 512                # vocab (embedding_weights.size(0)), multiple of 128
    MV = 8                 # meter embedding vocab

    sc = 0.1
    w0 = sc * jax.random.normal(keys[0], (Dm, Dm), jnp.float32)   # (in, out) layout
    b0 = sc * jax.random.normal(keys[1], (Dm,), jnp.float32)
    g0 = 1.0 + sc * jax.random.normal(keys[2], (Dm,), jnp.float32)
    be0 = sc * jax.random.normal(keys[3], (Dm,), jnp.float32)
    w1 = sc * jax.random.normal(keys[4], (Dm, De), jnp.float32)   # (in, out) layout
    b1 = sc * jax.random.normal(keys[5], (De,), jnp.float32)
    g1 = 1.0 + sc * jax.random.normal(keys[6], (De,), jnp.float32)
    be1 = sc * jax.random.normal(keys[7], (De,), jnp.float32)
    emb = sc * jax.random.normal(keys[8], (V, De), jnp.float32)        # tied decoder weight
    dec_bias = sc * jax.random.normal(keys[9], (V,), jnp.float32)
    meter_w = sc * jax.random.normal(keys[10], (MV, De), jnp.float32)  # padding_idx=0: fwd = lookup

    hidden = jax.random.normal(keys[11], (B, T, Dm), jnp.float32)
    meter_cond = jax.random.randint(keys[12], (B, T), 0, MV, dtype=jnp.int32)

    # Small tiles to exercise multiple token/vocab grid steps (grid = (2, 2)).
    logits = lm_prediction_head(hidden, meter_cond,
                                w0, b0, g0, be0, w1, b1, g1, be1,
                                meter_w, emb, dec_bias, tn=8, tv=256)
    jax.block_until_ready(logits)

    # ---- pure-JAX references (exact erf gelu, HIGHEST-precision matmuls) ----
    hp = jax.lax.Precision.HIGHEST

    def ref_gelu(x):
        return x * 0.5 * (1.0 + jax.scipy.special.erf(x / jnp.sqrt(2.0)))

    def ref_ln(x, g, b, eps=1e-5):
        mu = jnp.mean(x, -1, keepdims=True)
        var = jnp.mean((x - mu) ** 2, -1, keepdims=True)
        return (x - mu) / jnp.sqrt(var + eps) * g + b

    xf = hidden.reshape(-1, Dm)
    h = ref_ln(ref_gelu(jnp.dot(xf, w0, precision=hp) + b0), g0, be0)
    h = ref_ln(ref_gelu(jnp.dot(h, w1, precision=hp) + b1), g1, be1)
    me = meter_w[meter_cond.reshape(-1)]
    hd = h - me

    # Exact-f32 reference (module semantics).
    ref_f32 = (jnp.dot(hd, emb.T, precision=hp) + dec_bias).reshape(B, T, V)
    # Reference matching the kernel's mixed-precision decoder matmul
    # (bf16-rounded operands, f32 accumulation).
    ref_bf16 = (jnp.dot(hd.astype(jnp.bfloat16).astype(jnp.float32),
                        emb.T.astype(jnp.bfloat16).astype(jnp.float32),
                        precision=hp) + dec_bias).reshape(B, T, V)

    assert logits.shape == (B, T, V)
    max_err_mixed = float(jnp.max(jnp.abs(logits - ref_bf16)))
    max_err_exact = float(jnp.max(jnp.abs(logits - ref_f32)))
    # Tight check against the precision-matched reference.
    assert jnp.allclose(logits, ref_bf16, rtol=3e-3, atol=3e-3), max_err_mixed
    # Loose sanity check against the exact f32 module semantics (bf16 decoder operands).
    assert jnp.allclose(logits, ref_f32, rtol=2e-2, atol=2e-2), max_err_exact

    print("KERNEL_OK")
</pallas_src>

<mosaic_0001>
module attributes {stable_mosaic.version = 11 : i64} {
  func.func @_lm_head_kernel(%arg0: i32, %arg1: i32, %arg2: memref<8x32xf32, #tpu.memory_space<vmem>>, %arg3: memref<8x1xi32, #tpu.memory_space<vmem>>, %arg4: memref<32x32xf32, #tpu.memory_space<vmem>>, %arg5: memref<1x32xf32, #tpu.memory_space<vmem>>, %arg6: memref<1x32xf32, #tpu.memory_space<vmem>>, %arg7: memref<1x32xf32, #tpu.memory_space<vmem>>, %arg8: memref<32x64xf32, #tpu.memory_space<vmem>>, %arg9: memref<1x64xf32, #tpu.memory_space<vmem>>, %arg10: memref<1x64xf32, #tpu.memory_space<vmem>>, %arg11: memref<1x64xf32, #tpu.memory_space<vmem>>, %arg12: memref<8x64xf32, #tpu.memory_space<vmem>>, %arg13: memref<64x256xbf16, #tpu.memory_space<vmem>>, %arg14: memref<1x512xf32, #tpu.memory_space<vmem>>, %arg15: memref<8x256xf32, #tpu.memory_space<vmem>>, %arg16: memref<8x64xbf16, #tpu.memory_space<vmem>>) attributes {dimension_semantics = [#tpu.dimension_semantics<parallel>, #tpu.dimension_semantics<arbitrary>], iteration_bounds = array<i64: 2, 2>, scalar_prefetch = 0 : i64, scratch_operands = 1 : i64, tpu.core_type = #tpu.core_type<tc>, window_params = [{transform_indices = @transform_0, window_bounds = array<i64: 8, 32>}, {transform_indices = @transform_1, window_bounds = array<i64: 8, 1>}, {pipeline_mode = #tpu.pipeline_mode<synchronous>, transform_indices = @transform_2, window_bounds = array<i64: 32, 32>}, {pipeline_mode = #tpu.pipeline_mode<synchronous>, transform_indices = @transform_3, window_bounds = array<i64: 1, 32>}, {pipeline_mode = #tpu.pipeline_mode<synchronous>, transform_indices = @transform_4, window_bounds = array<i64: 1, 32>}, {pipeline_mode = #tpu.pipeline_mode<synchronous>, transform_indices = @transform_5, window_bounds = array<i64: 1, 32>}, {pipeline_mode = #tpu.pipeline_mode<synchronous>, transform_indices = @transform_6, window_bounds = array<i64: 32, 64>}, {pipeline_mode = #tpu.pipeline_mode<synchronous>, transform_indices = @transform_7, window_bounds = array<i64: 1, 64>}, {pipeline_mode = #tpu.pipeline_mode<synchronous>, transform_indices = @transform_8, window_bounds = array<i64: 1, 64>}, {pipeline_mode = #tpu.pipeline_mode<synchronous>, transform_indices = @transform_9, window_bounds = array<i64: 1, 64>}, {pipeline_mode = #tpu.pipeline_mode<synchronous>, transform_indices = @transform_10, window_bounds = array<i64: 8, 64>}, {transform_indices = @transform_11, window_bounds = array<i64: 64, 256>}, {pipeline_mode = #tpu.pipeline_mode<synchronous>, transform_indices = @transform_12, window_bounds = array<i64: 1, 512>}, {transform_indices = @transform_13, window_bounds = array<i64: 8, 256>}]} {
    %c0_i32 = arith.constant 0 : i32
    %0 = arith.cmpi eq, %arg1, %c0_i32 : i32
    %1 = arith.extui %0 : i1 to i32
    %c0_i32_0 = arith.constant 0 : i32
    %2 = arith.cmpi ne, %1, %c0_i32_0 : i32
    scf.if %2 {
      %c0_7 = arith.constant 0 : index
      %c0_8 = arith.constant 0 : index
      %13 = vector.load %arg2[%c0_7, %c0_8] : memref<8x32xf32, #tpu.memory_space<vmem>>, vector<8x32xf32>
      %c0_9 = arith.constant 0 : index
      %c0_10 = arith.constant 0 : index
      %14 = vector.load %arg4[%c0_9, %c0_10] : memref<32x32xf32, #tpu.memory_space<vmem>>, vector<32x32xf32>
      %cst_11 = arith.constant dense<0.000000e+00> : vector<8x32xf32>
      %15 = tpu.matmul %13, %14, %cst_11 {dimension_numbers = #tpu.dot_dimension_numbers<[1], [0], [0], [1], [0, 0, 1, 1], [], []>} : vector<8x32xf32>, vector<32x32xf32>, vector<8x32xf32> -> vector<8x32xf32>
      %c0_12 = arith.constant 0 : index
      %c0_13 = arith.constant 0 : index
      %16 = vector.load %arg5[%c0_12, %c0_13] : memref<1x32xf32, #tpu.memory_space<vmem>>, vector<1x32xf32>
      %17 = vector.broadcast %16 : vector<1x32xf32> to vector<8x32xf32>
      %18 = arith.addf %15, %17 : vector<8x32xf32>
      %cst_14 = arith.constant 5.000000e-01 : f32
      %19 = vector.broadcast %cst_14 : f32 to vector<8x32xf32>
      %20 = arith.mulf %18, %19 : vector<8x32xf32>
      %cst_15 = arith.constant 0.707106769 : f32
      %21 = vector.broadcast %cst_15 : f32 to vector<8x32xf32>
      %22 = arith.mulf %18, %21 : vector<8x32xf32>
      %cst_16 = arith.constant 0.000000e+00 : f32
      %23 = vector.broadcast %cst_16 : f32 to vector<8x32xf32>
      %24 = arith.cmpf oge, %22, %23 : vector<8x32xf32>
      %cst_17 = arith.constant 1.000000e+00 : f32
      %cst_18 = arith.constant -1.000000e+00 : f32
      %25 = vector.broadcast %cst_17 : f32 to vector<8x32xf32>
      %26 = vector.broadcast %cst_18 : f32 to vector<8x32xf32>
      %27 = arith.select %24, %25, %26 : vector<8x32xi1>, vector<8x32xf32>
      %28 = math.absf %22 : vector<8x32xf32>
      %cst_19 = arith.constant 0.327591091 : f32
      %29 = vector.broadcast %cst_19 : f32 to vector<8x32xf32>
      %30 = arith.mulf %29, %28 : vector<8x32xf32>
      %cst_20 = arith.constant 1.000000e+00 : f32
      %31 = vector.broadcast %cst_20 : f32 to vector<8x32xf32>
      %32 = arith.addf %31, %30 : vector<8x32xf32>
      %cst_21 = arith.constant 1.000000e+00 : f32
      %33 = vector.broadcast %cst_21 : f32 to vector<8x32xf32>
      %34 = arith.divf %33, %32 : vector<8x32xf32>
      %cst_22 = arith.constant 1.06140542 : f32
      %35 = vector.broadcast %cst_22 : f32 to vector<8x32xf32>
      %36 = arith.mulf %35, %34 : vector<8x32xf32>
      %cst_23 = arith.constant -1.45315206 : f32
      %37 = vector.broadcast %cst_23 : f32 to vector<8x32xf32>
      %38 = arith.addf %36, %37 : vector<8x32xf32>
      %39 = arith.mulf %38, %34 : vector<8x32xf32>
      %cst_24 = arith.constant 1.42141378 : f32
      %40 = vector.broadcast %cst_24 : f32 to vector<8x32xf32>
      %41 = arith.addf %39, %40 : vector<8x32xf32>
      %42 = arith.mulf %41, %34 : vector<8x32xf32>
      %cst_25 = arith.constant -0.284496725 : f32
      %43 = vector.broadcast %cst_25 : f32 to vector<8x32xf32>
      %44 = arith.addf %42, %43 : vector<8x32xf32>
      %45 = arith.mulf %44, %34 : vector<8x32xf32>
      %cst_26 = arith.constant 0.254829586 : f32
      %46 = vector.broadcast %cst_26 : f32 to vector<8x32xf32>
      %47 = arith.addf %45, %46 : vector<8x32xf32>
      %48 = arith.mulf %47, %34 : vector<8x32xf32>
      %49 = arith.mulf %28, %28 : vector<8x32xf32>
      %cst_27 = arith.constant 0.000000e+00 : f32
      %50 = vector.broadcast %cst_27 : f32 to vector<8x32xf32>
      %51 = arith.subf %50, %49 : vector<8x32xf32>
      %52 = math.exp %51 : vector<8x32xf32>
      %53 = arith.mulf %48, %52 : vector<8x32xf32>
      %cst_28 = arith.constant 1.000000e+00 : f32
      %54 = vector.broadcast %cst_28 : f32 to vector<8x32xf32>
      %55 = arith.subf %54, %53 : vector<8x32xf32>
      %56 = arith.mulf %27, %55 : vector<8x32xf32>
      %cst_29 = arith.constant 1.000000e+00 : f32
      %57 = vector.broadcast %cst_29 : f32 to vector<8x32xf32>
      %58 = arith.addf %57, %56 : vector<8x32xf32>
      %59 = arith.mulf %20, %58 : vector<8x32xf32>
      %c0_30 = arith.constant 0 : index
      %c0_31 = arith.constant 0 : index
      %60 = vector.load %arg6[%c0_30, %c0_31] : memref<1x32xf32, #tpu.memory_space<vmem>>, vector<1x32xf32>
      %c0_32 = arith.constant 0 : index
      %c0_33 = arith.constant 0 : index
      %61 = vector.load %arg7[%c0_32, %c0_33] : memref<1x32xf32, #tpu.memory_space<vmem>>, vector<1x32xf32>
      %cst_34 = arith.constant dense<0.000000e+00> : vector<8xf32>
      %62 = vector.multi_reduction <add>, %59, %cst_34 [1] : vector<8x32xf32> to vector<8xf32>
      %63 = vector.shape_cast %62 : vector<8xf32> to vector<8x1xf32>
      %cst_35 = arith.constant 3.200000e+01 : f32
      %64 = vector.broadcast %cst_35 : f32 to vector<8x1xf32>
      %65 = arith.divf %63, %64 : vector<8x1xf32>
      %66 = vector.broadcast %65 : vector<8x1xf32> to vector<8x32xf32>
      %67 = arith.subf %59, %66 : vector<8x32xf32>
      %68 = arith.mulf %67, %67 : vector<8x32xf32>
      %cst_36 = arith.constant dense<0.000000e+00> : vector<8xf32>
      %69 = vector.multi_reduction <add>, %68, %cst_36 [1] : vector<8x32xf32> to vector<8xf32>
      %70 = vector.shape_cast %69 : vector<8xf32> to vector<8x1xf32>
      %cst_37 = arith.constant 3.200000e+01 : f32
      %71 = vector.broadcast %cst_37 : f32 to vector<8x1xf32>
      %72 = arith.divf %70, %71 : vector<8x1xf32>
      %cst_38 = arith.constant 9.99999974E-6 : f32
      %73 = vector.broadcast %cst_38 : f32 to vector<8x1xf32>
      %74 = arith.addf %72, %73 : vector<8x1xf32>
      %75 = math.rsqrt %74 : vector<8x1xf32>
      %76 = vector.broadcast %75 : vector<8x1xf32> to vector<8x32xf32>
      %77 = arith.mulf %67, %76 : vector<8x32xf32>
      %78 = vector.broadcast %60 : vector<1x32xf32> to vector<8x32xf32>
      %79 = arith.mulf %77, %78 : vector<8x32xf32>
      %80 = vector.broadcast %61 : vector<1x32xf32> to vector<8x32xf32>
      %81 = arith.addf %79, %80 : vector<8x32xf32>
      %c0_39 = arith.constant 0 : index
      %c0_40 = arith.constant 0 : index
      %82 = vector.load %arg8[%c0_39, %c0_40] : memref<32x64xf32, #tpu.memory_space<vmem>>, vector<32x64xf32>
      %cst_41 = arith.constant dense<0.000000e+00> : vector<8x64xf32>
      %83 = tpu.matmul %81, %82, %cst_41 {dimension_numbers = #tpu.dot_dimension_numbers<[1], [0], [0], [1], [0, 0, 1, 1], [], []>} : vector<8x32xf32>, vector<32x64xf32>, vector<8x64xf32> -> vector<8x64xf32>
      %c0_42 = arith.constant 0 : index
      %c0_43 = arith.constant 0 : index
      %84 = vector.load %arg9[%c0_42, %c0_43] : memref<1x64xf32, #tpu.memory_space<vmem>>, vector<1x64xf32>
      %85 = vector.broadcast %84 : vector<1x64xf32> to vector<8x64xf32>
      %86 = arith.addf %83, %85 : vector<8x64xf32>
      %cst_44 = arith.constant 5.000000e-01 : f32
      %87 = vector.broadcast %cst_44 : f32 to vector<8x64xf32>
      %88 = arith.mulf %86, %87 : vector<8x64xf32>
      %cst_45 = arith.constant 0.707106769 : f32
      %89 = vector.broadcast %cst_45 : f32 to vector<8x64xf32>
      %90 = arith.mulf %86, %89 : vector<8x64xf32>
      %cst_46 = arith.constant 0.000000e+00 : f32
      %91 = vector.broadcast %cst_46 : f32 to vector<8x64xf32>
      %92 = arith.cmpf oge, %90, %91 : vector<8x64xf32>
      %cst_47 = arith.constant 1.000000e+00 : f32
      %cst_48 = arith.constant -1.000000e+00 : f32
      %93 = vector.broadcast %cst_47 : f32 to vector<8x64xf32>
      %94 = vector.broadcast %cst_48 : f32 to vector<8x64xf32>
      %95 = arith.select %92, %93, %94 : vector<8x64xi1>, vector<8x64xf32>
      %96 = math.absf %90 : vector<8x64xf32>
      %cst_49 = arith.constant 0.327591091 : f32
      %97 = vector.broadcast %cst_49 : f32 to vector<8x64xf32>
      %98 = arith.mulf %97, %96 : vector<8x64xf32>
      %cst_50 = arith.constant 1.000000e+00 : f32
      %99 = vector.broadcast %cst_50 : f32 to vector<8x64xf32>
      %100 = arith.addf %99, %98 : vector<8x64xf32>
      %cst_51 = arith.constant 1.000000e+00 : f32
      %101 = vector.broadcast %cst_51 : f32 to vector<8x64xf32>
      %102 = arith.divf %101, %100 : vector<8x64xf32>
      %cst_52 = arith.constant 1.06140542 : f32
      %103 = vector.broadcast %cst_52 : f32 to vector<8x64xf32>
      %104 = arith.mulf %103, %102 : vector<8x64xf32>
      %cst_53 = arith.constant -1.45315206 : f32
      %105 = vector.broadcast %cst_53 : f32 to vector<8x64xf32>
      %106 = arith.addf %104, %105 : vector<8x64xf32>
      %107 = arith.mulf %106, %102 : vector<8x64xf32>
      %cst_54 = arith.constant 1.42141378 : f32
      %108 = vector.broadcast %cst_54 : f32 to vector<8x64xf32>
      %109 = arith.addf %107, %108 : vector<8x64xf32>
      %110 = arith.mulf %109, %102 : vector<8x64xf32>
      %cst_55 = arith.constant -0.284496725 : f32
      %111 = vector.broadcast %cst_55 : f32 to vector<8x64xf32>
      %112 = arith.addf %110, %111 : vector<8x64xf32>
      %113 = arith.mulf %112, %102 : vector<8x64xf32>
      %cst_56 = arith.constant 0.254829586 : f32
      %114 = vector.broadcast %cst_56 : f32 to vector<8x64xf32>
      %115 = arith.addf %113, %114 : vector<8x64xf32>
      %116 = arith.mulf %115, %102 : vector<8x64xf32>
      %117 = arith.mulf %96, %96 : vector<8x64xf32>
      %cst_57 = arith.constant 0.000000e+00 : f32
      %118 = vector.broadcast %cst_57 : f32 to vector<8x64xf32>
      %119 = arith.subf %118, %117 : vector<8x64xf32>
      %120 = math.exp %119 : vector<8x64xf32>
      %121 = arith.mulf %116, %120 : vector<8x64xf32>
      %cst_58 = arith.constant 1.000000e+00 : f32
      %122 = vector.broadcast %cst_58 : f32 to vector<8x64xf32>
      %123 = arith.subf %122, %121 : vector<8x64xf32>
      %124 = arith.mulf %95, %123 : vector<8x64xf32>
      %cst_59 = arith.constant 1.000000e+00 : f32
      %125 = vector.broadcast %cst_59 : f32 to vector<8x64xf32>
      %126 = arith.addf %125, %124 : vector<8x64xf32>
      %127 = arith.mulf %88, %126 : vector<8x64xf32>
      %c0_60 = arith.constant 0 : index
      %c0_61 = arith.constant 0 : index
      %128 = vector.load %arg10[%c0_60, %c0_61] : memref<1x64xf32, #tpu.memory_space<vmem>>, vector<1x64xf32>
      %c0_62 = arith.constant 0 : index
      %c0_63 = arith.constant 0 : index
      %129 = vector.load %arg11[%c0_62, %c0_63] : memref<1x64xf32, #tpu.memory_space<vmem>>, vector<1x64xf32>
      %cst_64 = arith.constant dense<0.000000e+00> : vector<8xf32>
      %130 = vector.multi_reduction <add>, %127, %cst_64 [1] : vector<8x64xf32> to vector<8xf32>
      %131 = vector.shape_cast %130 : vector<8xf32> to vector<8x1xf32>
      %cst_65 = arith.constant 6.400000e+01 : f32
      %132 = vector.broadcast %cst_65 : f32 to vector<8x1xf32>
      %133 = arith.divf %131, %132 : vector<8x1xf32>
      %134 = vector.broadcast %133 : vector<8x1xf32> to vector<8x64xf32>
      %135 = arith.subf %127, %134 : vector<8x64xf32>
      %136 = arith.mulf %135, %135 : vector<8x64xf32>
      %cst_66 = arith.constant dense<0.000000e+00> : vector<8xf32>
      %137 = vector.multi_reduction <add>, %136, %cst_66 [1] : vector<8x64xf32> to vector<8xf32>
      %138 = vector.shape_cast %137 : vector<8xf32> to vector<8x1xf32>
      %cst_67 = arith.constant 6.400000e+01 : f32
      %139 = vector.broadcast %cst_67 : f32 to vector<8x1xf32>
      %140 = arith.divf %138, %139 : vector<8x1xf32>
      %cst_68 = arith.constant 9.99999974E-6 : f32
      %141 = vector.broadcast %cst_68 : f32 to vector<8x1xf32>
      %142 = arith.addf %140, %141 : vector<8x1xf32>
      %143 = math.rsqrt %142 : vector<8x1xf32>
      %144 = vector.broadcast %143 : vector<8x1xf32> to vector<8x64xf32>
      %145 = arith.mulf %135, %144 : vector<8x64xf32>
      %146 = vector.broadcast %128 : vector<1x64xf32> to vector<8x64xf32>
      %147 = arith.mulf %145, %146 : vector<8x64xf32>
      %148 = vector.broadcast %129 : vector<1x64xf32> to vector<8x64xf32>
      %149 = arith.addf %147, %148 : vector<8x64xf32>
      %c0_69 = arith.constant 0 : index
      %c0_70 = arith.constant 0 : index
      %150 = vector.load %arg3[%c0_69, %c0_70] : memref<8x1xi32, #tpu.memory_space<vmem>>, vector<8x1xi32>
      %151 = tpu.iota {dimensions = array<i32: 1>} : vector<8x8xi32>
      %152 = vector.broadcast %150 : vector<8x1xi32> to vector<8x8xi32>
      %153 = arith.cmpi eq, %151, %152 : vector<8x8xi32>
      %154 = arith.extui %153 : vector<8x8xi1> to vector<8x8xi32>
      %155 = arith.sitofp %154 : vector<8x8xi32> to vector<8x8xf32>
      %c0_71 = arith.constant 0 : index
      %c0_72 = arith.constant 0 : index
      %156 = vector.load %arg12[%c0_71, %c0_72] : memref<8x64xf32, #tpu.memory_space<vmem>>, vector<8x64xf32>
      %cst_73 = arith.constant dense<0.000000e+00> : vector<8x64xf32>
      %157 = tpu.matmul %155, %156, %cst_73 {dimension_numbers = #tpu.dot_dimension_numbers<[1], [0], [0], [1], [0, 0, 1, 1], [], []>} : vector<8x8xf32>, vector<8x64xf32>, vector<8x64xf32> -> vector<8x64xf32>
      %158 = arith.subf %149, %157 : vector<8x64xf32>
      %159 = arith.truncf %158 : vector<8x64xf32> to vector<8x64xbf16>
      %c0_74 = arith.constant 0 : index
      %c0_75 = arith.constant 0 : index
      %160 = vector.load %arg16[%c0_74, %c0_75] : memref<8x64xbf16, #tpu.memory_space<vmem>>, vector<8x64xbf16>
      tpu.vector_store %arg16[%c0_74, %c0_75], %159 {strides = array<i32>} : memref<8x64xbf16, #tpu.memory_space<vmem>>, vector<8x64xbf16>,
    } else {
    }
    %c0 = arith.constant 0 : index
    %c0_1 = arith.constant 0 : index
    %3 = vector.load %arg16[%c0, %c0_1] : memref<8x64xbf16, #tpu.memory_space<vmem>>, vector<8x64xbf16>
    %c0_2 = arith.constant 0 : index
    %c0_3 = arith.constant 0 : index
    %4 = vector.load %arg13[%c0_2, %c0_3] : memref<64x256xbf16, #tpu.memory_space<vmem>>, vector<64x256xbf16>
    %cst = arith.constant dense<0.000000e+00> : vector<8x256xf32>
    %5 = tpu.matmul %3, %4, %cst {dimension_numbers = #tpu.dot_dimension_numbers<[1], [0], [0], [1], [0, 0, 1, 1], [], []>} : vector<8x64xbf16>, vector<64x256xbf16>, vector<8x256xf32> -> vector<8x256xf32>
    %c256_i32 = arith.constant 256 : i32
    %6 = arith.muli %arg1, %c256_i32 : i32
    %7 = tpu.assume_multiple %6, 128 : i32
    %c0_4 = arith.constant 0 : index
    %8 = arith.index_cast %7 : i32 to index
    %9 = vector.load %arg14[%c0_4, %8] : memref<1x512xf32, #tpu.memory_space<vmem>>, vector<1x256xf32>
    %10 = vector.broadcast %9 : vector<1x256xf32> to vector<8x256xf32>
    %11 = arith.addf %5, %10 : vector<8x256xf32>
    %c0_5 = arith.constant 0 : index
    %c0_6 = arith.constant 0 : index
    %12 = vector.load %arg15[%c0_5, %c0_6] : memref<8x256xf32, #tpu.memory_space<vmem>>, vector<8x256xf32>
    tpu.vector_store %arg15[%c0_5, %c0_6], %11 {strides = array<i32>} : memref<8x256xf32, #tpu.memory_space<vmem>>, vector<8x256xf32>,
    return
  }
  func.func @transform_0(%arg0: i32, %arg1: i32) -> (i32, i32) {
    %c0_i32 = arith.constant 0 : i32
    %c0_i32_0 = arith.constant 0 : i32
    return %arg0, %c0_i32 : i32, i32
  }
  func.func @transform_1(%arg0: i32, %arg1: i32) -> (i32, i32) {
    %c0_i32 = arith.constant 0 : i32
    %c0_i32_0 = arith.constant 0 : i32
    return %arg0, %c0_i32 : i32, i32
  }
  func.func @transform_2(%arg0: i32, %arg1: i32) -> (i32, i32) {
    %c0_i32 = arith.constant 0 : i32
    %c0_i32_0 = arith.constant 0 : i32
    %c0_i32_1 = arith.constant 0 : i32
    return %c0_i32, %c0_i32_0 : i32, i32
  }
  func.func @transform_3(%arg0: i32, %arg1: i32) -> (i32, i32) {
    %c0_i32 = arith.constant 0 : i32
    %c0_i32_0 = arith.constant 0 : i32
    %c0_i32_1 = arith.constant 0 : i32
    return %c0_i32, %c0_i32_0 : i32, i32
  }
  func.func @transform_4(%arg0: i32, %arg1: i32) -> (i32, i32) {
    %c0_i32 = arith.constant 0 : i32
    %c0_i32_0 = arith.constant 0 : i32
    %c0_i32_1 = arith.constant 0 : i32
    return %c0_i32, %c0_i32_0 : i32, i32
  }
  func.func @transform_5(%arg0: i32, %arg1: i32) -> (i32, i32) {
    %c0_i32 = arith.constant 0 : i32
    %c0_i32_0 = arith.constant 0 : i32
    %c0_i32_1 = arith.constant 0 : i32
    return %c0_i32, %c0_i32_0 : i32, i32
  }
  func.func @transform_6(%arg0: i32, %arg1: i32) -> (i32, i32) {
    %c0_i32 = arith.constant 0 : i32
    %c0_i32_0 = arith.constant 0 : i32
    %c0_i32_1 = arith.constant 0 : i32
    return %c0_i32, %c0_i32_0 : i32, i32
  }
  func.func @transform_7(%arg0: i32, %arg1: i32) -> (i32, i32) {
    %c0_i32 = arith.constant 0 : i32
    %c0_i32_0 = arith.constant 0 : i32
    %c0_i32_1 = arith.constant 0 : i32
    return %c0_i32, %c0_i32_0 : i32, i32
  }
  func.func @transform_8(%arg0: i32, %arg1: i32) -> (i32, i32) {
    %c0_i32 = arith.constant 0 : i32
    %c0_i32_0 = arith.constant 0 : i32
    %c0_i32_1 = arith.constant 0 : i32
    return %c0_i32, %c0_i32_0 : i32, i32
  }
  func.func @transform_9(%arg0: i32, %arg1: i32) -> (i32, i32) {
    %c0_i32 = arith.constant 0 : i32
    %c0_i32_0 = arith.constant 0 : i32
    %c0_i32_1 = arith.constant 0 : i32
    return %c0_i32, %c0_i32_0 : i32, i32
  }
  func.func @transform_10(%arg0: i32, %arg1: i32) -> (i32, i32) {
    %c0_i32 = arith.constant 0 : i32
    %c0_i32_0 = arith.constant 0 : i32
    %c0_i32_1 = arith.constant 0 : i32
    return %c0_i32, %c0_i32_0 : i32, i32
  }
  func.func @transform_11(%arg0: i32, %arg1: i32) -> (i32, i32) {
    %c0_i32 = arith.constant 0 : i32
    %c0_i32_0 = arith.constant 0 : i32
    return %c0_i32, %arg1 : i32, i32
  }
  func.func @transform_12(%arg0: i32, %arg1: i32) -> (i32, i32) {
    %c0_i32 = arith.constant 0 : i32
    %c0_i32_0 = arith.constant 0 : i32
    %c0_i32_1 = arith.constant 0 : i32
    return %c0_i32, %c0_i32_0 : i32, i32
  }
  func.func @transform_13(%arg0: i32, %arg1: i32) -> (i32, i32) {
    %c0_i32 = arith.constant 0 : i32
    return %arg0, %arg1 : i32, i32
  }
}

module attributes {stable_mosaic.version = 11 : i64} {
  func.func @_lm_head_kernel(%arg0: i32, %arg1: i32, %arg2: memref<8x32xf32, #tpu.memory_space<vmem>>, %arg3: memref<8x1xi32, #tpu.memory_space<vmem>>, %arg4: memref<32x32xf32, #tpu.memory_space<vmem>>, %arg5: memref<1x32xf32, #tpu.memory_space<vmem>>, %arg6: memref<1x32xf32, #tpu.memory_space<vmem>>, %arg7: memref<1x32xf32, #tpu.memory_space<vmem>>, %arg8: memref<32x64xf32, #tpu.memory_space<vmem>>, %arg9: memref<1x64xf32, #tpu.memory_space<vmem>>, %arg10: memref<1x64xf32, #tpu.memory_space<vmem>>, %arg11: memref<1x64xf32, #tpu.memory_space<vmem>>, %arg12: memref<8x64xf32, #tpu.memory_space<vmem>>, %arg13: memref<64x256xbf16, #tpu.memory_space<vmem>>, %arg14: memref<1x512xf32, #tpu.memory_space<vmem>>, %arg15: memref<8x256xf32, #tpu.memory_space<vmem>>, %arg16: memref<8x64xbf16, #tpu.memory_space<vmem>>) attributes {dimension_semantics = [#tpu.dimension_semantics<parallel>, #tpu.dimension_semantics<arbitrary>], iteration_bounds = array<i64: 2, 2>, scalar_prefetch = 0 : i64, scratch_operands = 1 : i64, tpu.core_type = #tpu.core_type<tc>, window_params = [{transform_indices = @transform_0, window_bounds = array<i64: 8, 32>}, {transform_indices = @transform_1, window_bounds = array<i64: 8, 1>}, {pipeline_mode = #tpu.pipeline_mode<synchronous>, transform_indices = @transform_2, window_bounds = array<i64: 32, 32>}, {pipeline_mode = #tpu.pipeline_mode<synchronous>, transform_indices = @transform_3, window_bounds = array<i64: 1, 32>}, {pipeline_mode = #tpu.pipeline_mode<synchronous>, transform_indices = @transform_4, window_bounds = array<i64: 1, 32>}, {pipeline_mode = #tpu.pipeline_mode<synchronous>, transform_indices = @transform_5, window_bounds = array<i64: 1, 32>}, {pipeline_mode = #tpu.pipeline_mode<synchronous>, transform_indices = @transform_6, window_bounds = array<i64: 32, 64>}, {pipeline_mode = #tpu.pipeline_mode<synchronous>, transform_indices = @transform_7, window_bounds = array<i64: 1, 64>}, {pipeline_mode = #tpu.pipeline_mode<synchronous>, transform_indices = @transform_8, window_bounds = array<i64: 1, 64>}, {pipeline_mode = #tpu.pipeline_mode<synchronous>, transform_indices = @transform_9, window_bounds = array<i64: 1, 64>}, {pipeline_mode = #tpu.pipeline_mode<synchronous>, transform_indices = @transform_10, window_bounds = array<i64: 8, 64>}, {transform_indices = @transform_11, window_bounds = array<i64: 64, 256>}, {pipeline_mode = #tpu.pipeline_mode<synchronous>, transform_indices = @transform_12, window_bounds = array<i64: 1, 512>}, {transform_indices = @transform_13, window_bounds = array<i64: 8, 256>}]} {
    %c0_i32 = arith.constant 0 : i32
    %0 = arith.cmpi eq, %arg1, %c0_i32 : i32
    %1 = arith.extui %0 : i1 to i32
    %c0_i32_0 = arith.constant 0 : i32
    %2 = arith.cmpi ne, %1, %c0_i32_0 : i32
    scf.if %2 {
      %c0_7 = arith.constant 0 : index
      %c0_8 = arith.constant 0 : index
      %13 = vector.load %arg2[%c0_7, %c0_8] : memref<8x32xf32, #tpu.memory_space<vmem>>, vector<8x32xf32>
      %c0_9 = arith.constant 0 : index
      %c0_10 = arith.constant 0 : index
      %14 = vector.load %arg4[%c0_9, %c0_10] : memref<32x32xf32, #tpu.memory_space<vmem>>, vector<32x32xf32>
      %cst_11 = arith.constant dense<0.000000e+00> : vector<8x32xf32>
      %15 = tpu.matmul %13, %14, %cst_11 {dimension_numbers = #tpu.dot_dimension_numbers<[1], [0], [0], [1], [0, 0, 1, 1], [], []>} : vector<8x32xf32>, vector<32x32xf32>, vector<8x32xf32> -> vector<8x32xf32>
      %c0_12 = arith.constant 0 : index
      %c0_13 = arith.constant 0 : index
      %16 = vector.load %arg5[%c0_12, %c0_13] : memref<1x32xf32, #tpu.memory_space<vmem>>, vector<1x32xf32>
      %17 = vector.broadcast %16 : vector<1x32xf32> to vector<8x32xf32>
      %18 = arith.addf %15, %17 : vector<8x32xf32>
      %cst_14 = arith.constant 5.000000e-01 : f32
      %19 = vector.broadcast %cst_14 : f32 to vector<8x32xf32>
      %20 = arith.mulf %18, %19 : vector<8x32xf32>
      %cst_15 = arith.constant 0.707106769 : f32
      %21 = vector.broadcast %cst_15 : f32 to vector<8x32xf32>
      %22 = arith.mulf %18, %21 : vector<8x32xf32>
      %cst_16 = arith.constant 0.000000e+00 : f32
      %23 = vector.broadcast %cst_16 : f32 to vector<8x32xf32>
      %24 = arith.cmpf oge, %22, %23 : vector<8x32xf32>
      %cst_17 = arith.constant 1.000000e+00 : f32
      %cst_18 = arith.constant -1.000000e+00 : f32
      %25 = vector.broadcast %cst_17 : f32 to vector<8x32xf32>
      %26 = vector.broadcast %cst_18 : f32 to vector<8x32xf32>
      %27 = arith.select %24, %25, %26 : vector<8x32xi1>, vector<8x32xf32>
      %28 = math.absf %22 : vector<8x32xf32>
      %cst_19 = arith.constant 0.327591091 : f32
      %29 = vector.broadcast %cst_19 : f32 to vector<8x32xf32>
      %30 = arith.mulf %29, %28 : vector<8x32xf32>
      %cst_20 = arith.constant 1.000000e+00 : f32
      %31 = vector.broadcast %cst_20 : f32 to vector<8x32xf32>
      %32 = arith.addf %31, %30 : vector<8x32xf32>
      %cst_21 = arith.constant 1.000000e+00 : f32
      %33 = vector.broadcast %cst_21 : f32 to vector<8x32xf32>
      %34 = arith.divf %33, %32 : vector<8x32xf32>
      %cst_22 = arith.constant 1.06140542 : f32
      %35 = vector.broadcast %cst_22 : f32 to vector<8x32xf32>
      %36 = arith.mulf %35, %34 : vector<8x32xf32>
      %cst_23 = arith.constant -1.45315206 : f32
      %37 = vector.broadcast %cst_23 : f32 to vector<8x32xf32>
      %38 = arith.addf %36, %37 : vector<8x32xf32>
      %39 = arith.mulf %38, %34 : vector<8x32xf32>
      %cst_24 = arith.constant 1.42141378 : f32
      %40 = vector.broadcast %cst_24 : f32 to vector<8x32xf32>
      %41 = arith.addf %39, %40 : vector<8x32xf32>
      %42 = arith.mulf %41, %34 : vector<8x32xf32>
      %cst_25 = arith.constant -0.284496725 : f32
      %43 = vector.broadcast %cst_25 : f32 to vector<8x32xf32>
      %44 = arith.addf %42, %43 : vector<8x32xf32>
      %45 = arith.mulf %44, %34 : vector<8x32xf32>
      %cst_26 = arith.constant 0.254829586 : f32
      %46 = vector.broadcast %cst_26 : f32 to vector<8x32xf32>
      %47 = arith.addf %45, %46 : vector<8x32xf32>
      %48 = arith.mulf %47, %34 : vector<8x32xf32>
      %49 = arith.mulf %28, %28 : vector<8x32xf32>
      %cst_27 = arith.constant 0.000000e+00 : f32
      %50 = vector.broadcast %cst_27 : f32 to vector<8x32xf32>
      %51 = arith.subf %50, %49 : vector<8x32xf32>
      %52 = math.exp %51 : vector<8x32xf32>
      %53 = arith.mulf %48, %52 : vector<8x32xf32>
      %cst_28 = arith.constant 1.000000e+00 : f32
      %54 = vector.broadcast %cst_28 : f32 to vector<8x32xf32>
      %55 = arith.subf %54, %53 : vector<8x32xf32>
      %56 = arith.mulf %27, %55 : vector<8x32xf32>
      %cst_29 = arith.constant 1.000000e+00 : f32
      %57 = vector.broadcast %cst_29 : f32 to vector<8x32xf32>
      %58 = arith.addf %57, %56 : vector<8x32xf32>
      %59 = arith.mulf %20, %58 : vector<8x32xf32>
      %c0_30 = arith.constant 0 : index
      %c0_31 = arith.constant 0 : index
      %60 = vector.load %arg6[%c0_30, %c0_31] : memref<1x32xf32, #tpu.memory_space<vmem>>, vector<1x32xf32>
      %c0_32 = arith.constant 0 : index
      %c0_33 = arith.constant 0 : index
      %61 = vector.load %arg7[%c0_32, %c0_33] : memref<1x32xf32, #tpu.memory_space<vmem>>, vector<1x32xf32>
      %cst_34 = arith.constant dense<0.000000e+00> : vector<8xf32>
      %62 = vector.multi_reduction <add>, %59, %cst_34 [1] : vector<8x32xf32> to vector<8xf32>
      %63 = vector.shape_cast %62 : vector<8xf32> to vector<8x1xf32>
      %cst_35 = arith.constant 3.200000e+01 : f32
      %64 = vector.broadcast %cst_35 : f32 to vector<8x1xf32>
      %65 = arith.divf %63, %64 : vector<8x1xf32>
      %66 = vector.broadcast %65 : vector<8x1xf32> to vector<8x32xf32>
      %67 = arith.subf %59, %66 : vector<8x32xf32>
      %68 = arith.mulf %67, %67 : vector<8x32xf32>
      %cst_36 = arith.constant dense<0.000000e+00> : vector<8xf32>
      %69 = vector.multi_reduction <add>, %68, %cst_36 [1] : vector<8x32xf32> to vector<8xf32>
      %70 = vector.shape_cast %69 : vector<8xf32> to vector<8x1xf32>
      %cst_37 = arith.constant 3.200000e+01 : f32
      %71 = vector.broadcast %cst_37 : f32 to vector<8x1xf32>
      %72 = arith.divf %70, %71 : vector<8x1xf32>
      %cst_38 = arith.constant 9.99999974E-6 : f32
      %73 = vector.broadcast %cst_38 : f32 to vector<8x1xf32>
      %74 = arith.addf %72, %73 : vector<8x1xf32>
      %75 = math.rsqrt %74 : vector<8x1xf32>
      %76 = vector.broadcast %75 : vector<8x1xf32> to vector<8x32xf32>
      %77 = arith.mulf %67, %76 : vector<8x32xf32>
      %78 = vector.broadcast %60 : vector<1x32xf32> to vector<8x32xf32>
      %79 = arith.mulf %77, %78 : vector<8x32xf32>
      %80 = vector.broadcast %61 : vector<1x32xf32> to vector<8x32xf32>
      %81 = arith.addf %79, %80 : vector<8x32xf32>
      %c0_39 = arith.constant 0 : index
      %c0_40 = arith.constant 0 : index
      %82 = vector.load %arg8[%c0_39, %c0_40] : memref<32x64xf32, #tpu.memory_space<vmem>>, vector<32x64xf32>
      %cst_41 = arith.constant dense<0.000000e+00> : vector<8x64xf32>
      %83 = tpu.matmul %81, %82, %cst_41 {dimension_numbers = #tpu.dot_dimension_numbers<[1], [0], [0], [1], [0, 0, 1, 1], [], []>} : vector<8x32xf32>, vector<32x64xf32>, vector<8x64xf32> -> vector<8x64xf32>
      %c0_42 = arith.constant 0 : index
      %c0_43 = arith.constant 0 : index
      %84 = vector.load %arg9[%c0_42, %c0_43] : memref<1x64xf32, #tpu.memory_space<vmem>>, vector<1x64xf32>
      %85 = vector.broadcast %84 : vector<1x64xf32> to vector<8x64xf32>
      %86 = arith.addf %83, %85 : vector<8x64xf32>
      %cst_44 = arith.constant 5.000000e-01 : f32
      %87 = vector.broadcast %cst_44 : f32 to vector<8x64xf32>
      %88 = arith.mulf %86, %87 : vector<8x64xf32>
      %cst_45 = arith.constant 0.707106769 : f32
      %89 = vector.broadcast %cst_45 : f32 to vector<8x64xf32>
      %90 = arith.mulf %86, %89 : vector<8x64xf32>
      %cst_46 = arith.constant 0.000000e+00 : f32
      %91 = vector.broadcast %cst_46 : f32 to vector<8x64xf32>
      %92 = arith.cmpf oge, %90, %91 : vector<8x64xf32>
      %cst_47 = arith.constant 1.000000e+00 : f32
      %cst_48 = arith.constant -1.000000e+00 : f32
      %93 = vector.broadcast %cst_47 : f32 to vector<8x64xf32>
      %94 = vector.broadcast %cst_48 : f32 to vector<8x64xf32>
      %95 = arith.select %92, %93, %94 : vector<8x64xi1>, vector<8x64xf32>
      %96 = math.absf %90 : vector<8x64xf32>
      %cst_49 = arith.constant 0.327591091 : f32
      %97 = vector.broadcast %cst_49 : f32 to vector<8x64xf32>
      %98 = arith.mulf %97, %96 : vector<8x64xf32>
      %cst_50 = arith.constant 1.000000e+00 : f32
      %99 = vector.broadcast %cst_50 : f32 to vector<8x64xf32>
      %100 = arith.addf %99, %98 : vector<8x64xf32>
      %cst_51 = arith.constant 1.000000e+00 : f32
      %101 = vector.broadcast %cst_51 : f32 to vector<8x64xf32>
      %102 = arith.divf %101, %100 : vector<8x64xf32>
      %cst_52 = arith.constant 1.06140542 : f32
      %103 = vector.broadcast %cst_52 : f32 to vector<8x64xf32>
      %104 = arith.mulf %103, %102 : vector<8x64xf32>
      %cst_53 = arith.constant -1.45315206 : f32
      %105 = vector.broadcast %cst_53 : f32 to vector<8x64xf32>
      %106 = arith.addf %104, %105 : vector<8x64xf32>
      %107 = arith.mulf %106, %102 : vector<8x64xf32>
      %cst_54 = arith.constant 1.42141378 : f32
      %108 = vector.broadcast %cst_54 : f32 to vector<8x64xf32>
      %109 = arith.addf %107, %108 : vector<8x64xf32>
      %110 = arith.mulf %109, %102 : vector<8x64xf32>
      %cst_55 = arith.constant -0.284496725 : f32
      %111 = vector.broadcast %cst_55 : f32 to vector<8x64xf32>
      %112 = arith.addf %110, %111 : vector<8x64xf32>
      %113 = arith.mulf %112, %102 : vector<8x64xf32>
      %cst_56 = arith.constant 0.254829586 : f32
      %114 = vector.broadcast %cst_56 : f32 to vector<8x64xf32>
      %115 = arith.addf %113, %114 : vector<8x64xf32>
      %116 = arith.mulf %115, %102 : vector<8x64xf32>
      %117 = arith.mulf %96, %96 : vector<8x64xf32>
      %cst_57 = arith.constant 0.000000e+00 : f32
      %118 = vector.broadcast %cst_57 : f32 to vector<8x64xf32>
      %119 = arith.subf %118, %117 : vector<8x64xf32>
      %120 = math.exp %119 : vector<8x64xf32>
      %121 = arith.mulf %116, %120 : vector<8x64xf32>
      %cst_58 = arith.constant 1.000000e+00 : f32
      %122 = vector.broadcast %cst_58 : f32 to vector<8x64xf32>
      %123 = arith.subf %122, %121 : vector<8x64xf32>
      %124 = arith.mulf %95, %123 : vector<8x64xf32>
      %cst_59 = arith.constant 1.000000e+00 : f32
      %125 = vector.broadcast %cst_59 : f32 to vector<8x64xf32>
      %126 = arith.addf %125, %124 : vector<8x64xf32>
      %127 = arith.mulf %88, %126 : vector<8x64xf32>
      %c0_60 = arith.constant 0 : index
      %c0_61 = arith.constant 0 : index
      %128 = vector.load %arg10[%c0_60, %c0_61] : memref<1x64xf32, #tpu.memory_space<vmem>>, vector<1x64xf32>
      %c0_62 = arith.constant 0 : index
      %c0_63 = arith.constant 0 : index
      %129 = vector.load %arg11[%c0_62, %c0_63] : memref<1x64xf32, #tpu.memory_space<vmem>>, vector<1x64xf32>
      %cst_64 = arith.constant dense<0.000000e+00> : vector<8xf32>
      %130 = vector.multi_reduction <add>, %127, %cst_64 [1] : vector<8x64xf32> to vector<8xf32>
      %131 = vector.shape_cast %130 : vector<8xf32> to vector<8x1xf32>
      %cst_65 = arith.constant 6.400000e+01 : f32
      %132 = vector.broadcast %cst_65 : f32 to vector<8x1xf32>
      %133 = arith.divf %131, %132 : vector<8x1xf32>
      %134 = vector.broadcast %133 : vector<8x1xf32> to vector<8x64xf32>
      %135 = arith.subf %127, %134 : vector<8x64xf32>
      %136 = arith.mulf %135, %135 : vector<8x64xf32>
      %cst_66 = arith.constant dense<0.000000e+00> : vector<8xf32>
      %137 = vector.multi_reduction <add>, %136, %cst_66 [1] : vector<8x64xf32> to vector<8xf32>
      %138 = vector.shape_cast %137 : vector<8xf32> to vector<8x1xf32>
      %cst_67 = arith.constant 6.400000e+01 : f32
      %139 = vector.broadcast %cst_67 : f32 to vector<8x1xf32>
      %140 = arith.divf %138, %139 : vector<8x1xf32>
      %cst_68 = arith.constant 9.99999974E-6 : f32
      %141 = vector.broadcast %cst_68 : f32 to vector<8x1xf32>
      %142 = arith.addf %140, %141 : vector<8x1xf32>
      %143 = math.rsqrt %142 : vector<8x1xf32>
      %144 = vector.broadcast %143 : vector<8x1xf32> to vector<8x64xf32>
      %145 = arith.mulf %135, %144 : vector<8x64xf32>
      %146 = vector.broadcast %128 : vector<1x64xf32> to vector<8x64xf32>
      %147 = arith.mulf %145, %146 : vector<8x64xf32>
      %148 = vector.broadcast %129 : vector<1x64xf32> to vector<8x64xf32>
      %149 = arith.addf %147, %148 : vector<8x64xf32>
      %c0_69 = arith.constant 0 : index
      %c0_70 = arith.constant 0 : index
      %150 = vector.load %arg3[%c0_69, %c0_70] : memref<8x1xi32, #tpu.memory_space<vmem>>, vector<8x1xi32>
      %151 = tpu.iota {dimensions = array<i32: 1>} : vector<8x8xi32>
      %152 = vector.broadcast %150 : vector<8x1xi32> to vector<8x8xi32>
      %153 = arith.cmpi eq, %151, %152 : vector<8x8xi32>
      %154 = arith.extui %153 : vector<8x8xi1> to vector<8x8xi32>
      %155 = arith.sitofp %154 : vector<8x8xi32> to vector<8x8xf32>
      %c0_71 = arith.constant 0 : index
      %c0_72 = arith.constant 0 : index
      %156 = vector.load %arg12[%c0_71, %c0_72] : memref<8x64xf32, #tpu.memory_space<vmem>>, vector<8x64xf32>
      %cst_73 = arith.constant dense<0.000000e+00> : vector<8x64xf32>
      %157 = tpu.matmul %155, %156, %cst_73 {dimension_numbers = #tpu.dot_dimension_numbers<[1], [0], [0], [1], [0, 0, 1, 1], [], []>} : vector<8x8xf32>, vector<8x64xf32>, vector<8x64xf32> -> vector<8x64xf32>
      %158 = arith.subf %149, %157 : vector<8x64xf32>
      %159 = arith.truncf %158 : vector<8x64xf32> to vector<8x64xbf16>
      %c0_74 = arith.constant 0 : index
      %c0_75 = arith.constant 0 : index
      %160 = vector.load %arg16[%c0_74, %c0_75] : memref<8x64xbf16, #tpu.memory_space<vmem>>, vector<8x64xbf16>
      tpu.vector_store %arg16[%c0_74, %c0_75], %159 {strides = array<i32>} : memref<8x64xbf16, #tpu.memory_space<vmem>>, vector<8x64xbf16>,
    } else {
    }
    %c0 = arith.constant 0 : index
    %c0_1 = arith.constant 0 : index
    %3 = vector.load %arg16[%c0, %c0_1] : memref<8x64xbf16, #tpu.memory_space<vmem>>, vector<8x64xbf16>
    %c0_2 = arith.constant 0 : index
    %c0_3 = arith.constant 0 : index
    %4 = vector.load %arg13[%c0_2, %c0_3] : memref<64x256xbf16, #tpu.memory_space<vmem>>, vector<64x256xbf16>
    %cst = arith.constant dense<0.000000e+00> : vector<8x256xf32>
    %5 = tpu.matmul %3, %4, %cst {dimension_numbers = #tpu.dot_dimension_numbers<[1], [0], [0], [1], [0, 0, 1, 1], [], []>} : vector<8x64xbf16>, vector<64x256xbf16>, vector<8x256xf32> -> vector<8x256xf32>
    %c256_i32 = arith.constant 256 : i32
    %6 = arith.muli %arg1, %c256_i32 : i32
    %7 = tpu.assume_multiple %6, 128 : i32
    %c0_4 = arith.constant 0 : index
    %8 = arith.index_cast %7 : i32 to index
    %9 = vector.load %arg14[%c0_4, %8] : memref<1x512xf32, #tpu.memory_space<vmem>>, vector<1x256xf32>
    %10 = vector.broadcast %9 : vector<1x256xf32> to vector<8x256xf32>
    %11 = arith.addf %5, %10 : vector<8x256xf32>
    %c0_5 = arith.constant 0 : index
    %c0_6 = arith.constant 0 : index
    %12 = vector.load %arg15[%c0_5, %c0_6] : memref<8x256xf32, #tpu.memory_space<vmem>>, vector<8x256xf32>
    tpu.vector_store %arg15[%c0_5, %c0_6], %11 {strides = array<i32>} : memref<8x256xf32, #tpu.memory_space<vmem>>, vector<8x256xf32>,
    return
  }
  func.func @transform_0(%arg0: i32, %arg1: i32) -> (i32, i32) {
    %c0_i32 = arith.constant 0 : i32
    %c0_i32_0 = arith.constant 0 : i32
    return %arg0, %c0_i32 : i32, i32
  }
  func.func @transform_1(%arg0: i32, %arg1: i32) -> (i32, i32) {
    %c0_i32 = arith.constant 0 : i32
    %c0_i32_0 = arith.constant 0 : i32
    return %arg0, %c0_i32 : i32, i32
  }
  func.func @transform_2(%arg0: i32, %arg1: i32) -> (i32, i32) {
    %c0_i32 = arith.constant 0 : i32
    %c0_i32_0 = arith.constant 0 : i32
    %c0_i32_1 = arith.constant 0 : i32
    return %c0_i32, %c0_i32_0 : i32, i32
  }
  func.func @transform_3(%arg0: i32, %arg1: i32) -> (i32, i32) {
    %c0_i32 = arith.constant 0 : i32
    %c0_i32_0 = arith.constant 0 : i32
    %c0_i32_1 = arith.constant 0 : i32
    return %c0_i32, %c0_i32_0 : i32, i32
  }
  func.func @transform_4(%arg0: i32, %arg1: i32) -> (i32, i32) {
    %c0_i32 = arith.constant 0 : i32
    %c0_i32_0 = arith.constant 0 : i32
    %c0_i32_1 = arith.constant 0 : i32
    return %c0_i32, %c0_i32_0 : i32, i32
  }
  func.func @transform_5(%arg0: i32, %arg1: i32) -> (i32, i32) {
    %c0_i32 = arith.constant 0 : i32
    %c0_i32_0 = arith.constant 0 : i32
    %c0_i32_1 = arith.constant 0 : i32
    return %c0_i32, %c0_i32_0 : i32, i32
  }
  func.func @transform_6(%arg0: i32, %arg1: i32) -> (i32, i32) {
    %c0_i32 = arith.constant 0 : i32
    %c0_i32_0 = arith.constant 0 : i32
    %c0_i32_1 = arith.constant 0 : i32
    return %c0_i32, %c0_i32_0 : i32, i32
  }
  func.func @transform_7(%arg0: i32, %arg1: i32) -> (i32, i32) {
    %c0_i32 = arith.constant 0 : i32
    %c0_i32_0 = arith.constant 0 : i32
    %c0_i32_1 = arith.constant 0 : i32
    return %c0_i32, %c0_i32_0 : i32, i32
  }
  func.func @transform_8(%arg0: i32, %arg1: i32) -> (i32, i32) {
    %c0_i32 = arith.constant 0 : i32
    %c0_i32_0 = arith.constant 0 : i32
    %c0_i32_1 = arith.constant 0 : i32
    return %c0_i32, %c0_i32_0 : i32, i32
  }
  func.func @transform_9(%arg0: i32, %arg1: i32) -> (i32, i32) {
    %c0_i32 = arith.constant 0 : i32
    %c0_i32_0 = arith.constant 0 : i32
    %c0_i32_1 = arith.constant 0 : i32
    return %c0_i32, %c0_i32_0 : i32, i32
  }
  func.func @transform_10(%arg0: i32, %arg1: i32) -> (i32, i32) {
    %c0_i32 = arith.constant 0 : i32
    %c0_i32_0 = arith.constant 0 : i32
    %c0_i32_1 = arith.constant 0 : i32
    return %c0_i32, %c0_i32_0 : i32, i32
  }
  func.func @transform_11(%arg0: i32, %arg1: i32) -> (i32, i32) {
    %c0_i32 = arith.constant 0 : i32
    %c0_i32_0 = arith.constant 0 : i32
    return %c0_i32, %arg1 : i32, i32
  }
  func.func @transform_12(%arg0: i32, %arg1: i32) -> (i32, i32) {
    %c0_i32 = arith.constant 0 : i32
    %c0_i32_0 = arith.constant 0 : i32
    %c0_i32_1 = arith.constant 0 : i32
    return %c0_i32, %c0_i32_0 : i32, i32
  }
  func.func @transform_13(%arg0: i32, %arg1: i32) -> (i32, i32) {
    %c0_i32 = arith.constant 0 : i32
    return %arg0, %arg1 : i32, i32
  }
}

</mosaic_0001>

<bundles_post_ra>
// kernel: tpu_custom_call.1
= control target key start
LH: loop header
LB: loop body
LE: loop exit
PB: predicated region body
PF: predicated region fallthrough
CT: control target
= control target key end

     0   :  { %s2301_s0 = inlined_call_operand.vmem [shape: f32[16,32], index: 0, kind: input, shape index: {}]   ;;  %s2302_s1 = inlined_call_operand.vmem [shape: s32[16,1], index: 1, kind: input, shape index: {}]   ;;  %s2303_s2 = inlined_call_operand.hbm [shape: f32[32,32], index: 2, kind: input, shape index: {}]   ;;  %s2304_s3 = inlined_call_operand.hbm [shape: f32[1,32], index: 3, kind: input, shape index: {}]   ;;  %s2305_s4 = inlined_call_operand.hbm [shape: f32[1,32], index: 4, kind: input, shape index: {}]   ;;  %s2306_s5 = inlined_call_operand.hbm [shape: f32[1,32], index: 5, kind: input, shape index: {}]   ;;  %s2307_s6 = inlined_call_operand.hbm [shape: f32[32,64], index: 6, kind: input, shape index: {}]   ;;  %s2308_s7 = inlined_call_operand.hbm [shape: f32[1,64], index: 7, kind: input, shape index: {}]   ;;  %s2309_s8 = inlined_call_operand.hbm [shape: f32[1,64], index: 8, kind: input, shape index: {}]   ;;  %s2310_s9 = inlined_call_operand.hbm [shape: f32[1,64], index: 9, kind: input, shape index: {}]   ;;  %s2311_s10 = inlined_call_operand.vmem [shape: f32[8,64], index: 10, kind: input, shape index: {}]   ;;  %s2312_s11 = inlined_call_operand.hbm [shape: bf16[64,512], index: 11, kind: input, shape index: {}]   ;;  %s2313_s12 = inlined_call_operand.vmem [shape: f32[1,512], index: 12, kind: input, shape index: {}]   ;;  %s2314_s13 = inlined_call_operand.hbm [shape: f32[16,512], index: 13, kind: output, shape index: {}]  }
   0x1   :  { %2322 = sst [smem:[#allocation31_spill]] %s2301_s0 }
   0x2   :  { %2323 = sst [smem:[#allocation32_spill]] %s2302_s1 }
   0x3   :  { %2324 = sst [smem:[#allocation33_spill]] %s2303_s2 }
   0x4   :  { %2325 = sst [smem:[#allocation34_spill]] %s2304_s3 }
   0x5   :  { %2326 = sst [smem:[#allocation35_spill]] %s2305_s4 }
   0x6   :  { %2327 = sst [smem:[#allocation36_spill]] %s2306_s5 }
   0x7   :  { %2328 = sst [smem:[#allocation37_spill]] %s2307_s6 }
   0x8   :  { %2329 = sst [smem:[#allocation38_spill]] %s2308_s7 }
   0x9   :  { %2330 = sst [smem:[#allocation39_spill]] %s2309_s8 }
   0xa   :  { %2331 = sst [smem:[#allocation40_spill]] %s2310_s9 }
   0xb   :  { %2332 = sst [smem:[#allocation41_spill]] %s2311_s10 }
   0xc   :  { %2333 = sst [smem:[#allocation42_spill]] %s2312_s11 }
   0xd   :  { %2334 = sst [smem:[#allocation43_spill]] %s2313_s12 }
   0xe   :  { %2335 = sst [smem:[#allocation44_spill]] %s2314_s13 }
   0xf   :  { %18 = vsyncpa [#allocation4], 0 }
  0x10   :  { %19 = vsyncpa [#allocation7], 0 }
  0x11   :  { %20 = vsyncpa [#allocation10], 0 }
  0x12   :  { %21 = vsyncpa [#allocation13], 0 }
  0x13   :  { %22 = vsyncpa [#allocation16], 0 }
  0x14   :  { %23 = vsyncpa [#allocation5], 0 }
  0x15   :  { %25 = vsyncpa [#allocation5 + $0x1], 0  ;;  %s1988_s25 = smov 0   ;;  %s1990_s26 = smov 0  }
  0x16   :  { %s1992_s27 = smov 0   ;;  %s1994_s28 = smov 0  }
  0x17   :  { %s1996_s29 = smov 0   ;;  %s1998_s30 = smov 0  }
  0x18   :  { %s2000_s14 = smov 0   ;;  %s2002_s15 = smov 0  }
  0x19   :  { %s2004_s16 = smov 0   ;;  %s2006_s17 = smov 0  }
  0x1a   :  { %s2008_s18 = smov 0  }
  0x1b LB: > { %2336 = sst [smem:[#allocation26_spill]] %s1860_s25  ;;  %s2044_s19 = sadd.s32 4294967295, %s1900_s18   ;;  %s1900_s18 = sphi %s2008_s18, %s31_s18   ;;  %s1896_s17 = sphi %s2006_s17, %s2381_s17   ;;  %s1892_s16 = sphi %s2004_s16, %s2380_s16   ;;  %s1888_s15 = sphi %s2002_s15, %s2379_s15   ;;  %s1884_s14 = sphi %s2000_s14, %s2378_s14   ;;  %s1880_s30 = sphi %s1998_s30, %s2377_s30   ;;  %s1876_s29 = sphi %s1996_s29, %s2376_s29   ;;  %s1872_s28 = sphi %s1994_s28, %s2375_s28   ;;  %s1868_s27 = sphi %s1992_s27, %s2374_s27   ;;  %s1864_s26 = sphi %s1990_s26, %s2373_s26   ;;  %s1860_s25 = sphi %s1988_s25, %s2372_s25  }
  0x1c   : > { %2337 = sst [smem:[#allocation27_spill]] %s1884_s14  ;;  %p1192_p0 = scmp.ge.s32.totalorder %s1900_s18, 1 }
  0x1d   : > { %2338 = sst [smem:[#allocation28_spill]] %s1888_s15  ;;  %p305_p1 = scmp.eq.s32.totalorder %s2044_s19, 0 }
  0x1e   : > { %p364_p2 = scmp.lt.s32.totalorder %s1900_s18, 5  ;;  %s2339_s2 = sld [smem:[#allocation33_spill]] }
  0x1f   : > { %s1902_s24 = smov [#allocation3]   ;;  %s2343_s3 = sld [smem:[#allocation34_spill]] }
  0x20   : > { %p2052_p3 = pnand %p1192_p0, %p364_p2  ;;  %s377_s13 = sshll.u32 %s1902_s24, 4  ;;  %s378_s13 = int_to_ptr.vmem [resolvable:$true] %s377_s13 }
  0x21   : > { %s2319_s21 = smov 128   ;;  %s1905_s24 = smov [#allocation6]  }
  0x22   : > { %s2340_s23 = scalar_select %p2052_p3, 1, 0 }
  0x23   : > { %p1309_p4 = pneg %p2052_p3  ;;  %s392_s1 = sshll.u32 %s1905_s24, 4  ;;  %s393_s1 = int_to_ptr.vmem [resolvable:$true] %s392_s1 }
  0x24   : > { %s375_s22 = sshll.u32 %s2339_s2, 4  ;;  %2341 = sst [smem:[#allocation29_spill]] %s2340_s23  ;;  %s376_s22 = int_to_ptr.hbm [resolvable:$true] %s375_s22 }
  0x25   : > { %p2060_p5 = pnand %p1309_p4, %p305_p1  ;;  %s390_s20 = sshll.u32 %s2343_s3, 4  ;;  %s391_s20 = int_to_ptr.hbm [resolvable:$true] %s390_s20 }
  0x26   : > { %s2320_s2 = smov 8   ;;  %s2344_s5 = sld [smem:[#allocation36_spill]] }
  0x27   : > { %1312 = dma.hbm_to_vmem [thread:$0]  (!%p2060_p5), %s376_s22, 512, %s378_s13, [#allocation4], %s2319_s21, %s2319_s21, %s2320_s2  }
  0x28   : > { %1315 = dma.hbm_to_vmem [thread:$0]  (!%p2060_p5), %s391_s20, 16, %s393_s1, [#allocation7]  }
  0x29   : > { %s2345_s7 = sld [smem:[#allocation38_spill]]  ;;  %s1906_s11 = smov [#allocation9]  }
  0x2a   : > { %s416_s25 = sshll.u32 %s1906_s11, 4  ;;  %s1907_s13 = smov [#allocation12]   ;;  %s417_s25 = int_to_ptr.vmem [resolvable:$true] %s416_s25 }
  0x2b   : > { %s442_s22 = sshll.u32 %s1907_s13, 4  ;;  %s2346_s4 = sld [smem:[#allocation35_spill]]  ;;  %s443_s22 = int_to_ptr.vmem [resolvable:$true] %s442_s22 }
  0x2c   : > { %s414_s23 = sshll.u32 %s2344_s5, 4  ;;  %s2347_s6 = sld [smem:[#allocation37_spill]]  ;;  %s415_s23 = int_to_ptr.hbm [resolvable:$true] %s414_s23 }
  0x2d   : > { %1321 = dma.hbm_to_vmem [thread:$0]  (!%p2060_p5), %s415_s23, 16, %s417_s25, [#allocation10]  }
  0x2e   : > { %s1908_s11 = smov [#allocation8]   ;;  %s1909_s25 = smov [#allocation11]  }
  0x2f   : > { %s440_s3 = sshll.u32 %s2345_s7, 4  ;;  %s404_s14 = sshll.u32 %s1908_s11, 4  ;;  %s441_s3 = int_to_ptr.hbm [resolvable:$true] %s440_s3  ;;  %s405_s14 = int_to_ptr.vmem [resolvable:$true] %s404_s14 }
  0x30   : > { %1327 = dma.hbm_to_vmem [thread:$0]  (!%p2060_p5), %s441_s3, 16, %s443_s22, [#allocation13]  }
  0x31   : > { %s402_s24 = sshll.u32 %s2346_s4, 4  ;;  %s427_s23 = sshll.u32 %s1909_s25, 4  ;;  %s403_s24 = int_to_ptr.hbm [resolvable:$true] %s402_s24  ;;  %s428_s23 = int_to_ptr.vmem [resolvable:$true] %s427_s23 }
  0x32   : > { %s425_s10 = sshll.u32 %s2347_s6, 4  ;;  %s2348_s8 = sld [smem:[#allocation39_spill]]  ;;  %s426_s10 = int_to_ptr.hbm [resolvable:$true] %s425_s10 }
  0x33   : > { %1318 = dma.hbm_to_vmem [thread:$0]  (!%p2060_p5), %s403_s24, 16, %s405_s14, [#allocation7]  }
  0x34   : > { %1324 = dma.hbm_to_vmem [thread:$0]  (!%p2060_p5), %s426_s10, 512, %s428_s23, [#allocation10], %s2319_s21, %s2319_s21, %s2320_s2  }
  0x35   : > { %s2349_s9 = sld [smem:[#allocation40_spill]]  ;;  %s1910_s1 = smov [#allocation14]  }
  0x36   : > { %s454_s20 = sshll.u32 %s1910_s1, 4  ;;  %s1911_s11 = smov [#allocation15]   ;;  %s455_s20 = int_to_ptr.vmem [resolvable:$true] %s454_s20 }
  0x37   : > { %s466_s14 = sshll.u32 %s1911_s11, 4  ;;  %s1191_s10 = sadd.s32 4294967294, %s1900_s18   ;;  %s467_s14 = int_to_ptr.vmem [resolvable:$true] %s466_s14 }
  0x38   : > { %s452_s3 = sshll.u32 %s2348_s8, 4  ;;  %s40_s25 = sadd.s32 1, %s1892_s16  ;;  %s453_s3 = int_to_ptr.hbm [resolvable:$true] %s452_s3 }
  0x39   : > { %1330 = dma.hbm_to_vmem [thread:$0]  (!%p2060_p5), %s453_s3, 16, %s455_s20, [#allocation13]  }
  0x3a   : > { %p41_p6 = scmp.ge.s32.totalorder %s40_s25, 2  ;;  %s43_s23 = sadd.s32 1, %s1896_s17 }
  0x3b   : > { %s464_s24 = sshll.u32 %s2349_s9, 4  ;;  %s291_s13 = sadd.s32 1, %s1880_s30  ;;  %s465_s24 = int_to_ptr.hbm [resolvable:$true] %s464_s24 }
  0x3c   : > { %1333 = dma.hbm_to_vmem [thread:$0]  (!%p2060_p5), %s465_s24, 16, %s467_s14, [#allocation16]  }
  0x3d   : > { %p298_p7 = scmp.ne.s32.totalorder %s1880_s30, %s1876_s29  ;;  %s2383_s25 = smov (%p41_p6, %s40_s25), 0 }
  0x3e   : > { %s2385_s23 = smov (!%p41_p6, %s43_s23), %s1896_s17  ;;  %s2350_s0 = sld [smem:[#allocation26_spill]] }
  0x3f   : > { %s288_s12 = ssub.s32 %s1892_s16, %s2383_s25  ;;  %p299_p8 = scmp.eq.s32.totalorder %s1900_s18, 0 }
  0x40   : > { %p45_p9 = scmp.ge.s32.totalorder %s2385_s23, 2  ;;  %p289_p10 = scmp.eq.s32.totalorder %s288_s12, 0 }
  0x41   : > { %p2119_p11 = por %p299_p8, %p298_p7  ;;  %p304_p12 = scmp.ne.s32.totalorder %s1876_s29, %s1872_s28 }
  0x42   : > { %s2387_s23 = smov (%p45_p9, %s2385_s23), 0  ;;  %s340_s20 = sadd.s32 1, %s1868_s27 }
  0x43   : > { %2352 = sst [smem:[#allocation30_spill]] %s2387_s23  ;;  %p2132_p13 = por %p305_p1, %p304_p12 }
  0x44   : > { %s2128_s22 = scalar_select %p289_p10, %s1880_s30, %s291_s13  }
  0x45   : > { %s335_s24 = ssub.s32 %s1896_s17, %s2387_s23  ;;  %p350_p2 = scmp.ne.s32.totalorder %s1868_s27, %s1864_s26 }
  0x46   : > { %s337_s1 = sor.u32 %s335_s24, %s288_s12  ;;  %p351_p4 = scmp.eq.s32.totalorder %s2044_s19, 3 }
  0x47   : > { %p338_p0 = scmp.eq.s32.totalorder %s337_s1, 0  ;;  %p356_p5 = scmp.ne.s32.totalorder %s1864_s26, %s2350_s0 }
  0x48   : > { %p2147_p6 = por %p351_p4, %p350_p2  ;;  %p357_p7 = scmp.eq.s32.totalorder %s1191_s10, 3 }
  0x49   : > { %s2145_s28 = scalar_select %p338_p0, %s1868_s27, %s340_s20  }
  0x4a   : > { %p1350_p8 = scmp.lt.s32.totalorder %s1900_s18, 4  ;;  %s497_s14 = sand.u32 1, %s1900_s18  }
  0x4b   : > { %p2153_p9 = por %p357_p7, %p356_p5  ;;  %s499_s12 = sand.u32 1, %s1880_s30  }
  0x4c   : > { %s1264_s24 = sshll.u32 %s1892_s16, 3  ;;  %s1202_s1 = sshll.u32 %s499_s12, 6 }
  0x4d   : > { %s2356_s0 = sld [smem:[#allocation42_spill]]  ;;  %s501_s5 = scalar_lea.vmem [#allocation17], %s1202_s1 }
  0x4e   : > { %s509_s6 = sshll.u32 %s501_s5, 4  ;;  %p1335_p10 = pnand %p1350_p8, %p2119_p11  ;;  %s510_s6 = int_to_ptr.vmem [resolvable:$true] %s509_s6 }
  0x4f   : > { %s498_s10 = scalar_lea.sflag [#allocation4], %s497_s14  ;;  %s1912_s7 = smov 256  }
  0x50   : > { %s2357_s8 = smov 8   ;;  %s2358_s9 = smov 128  }
  0x51   : > { %521 = sbr.rel (%p2052_p3) target bundleno = 1179 (0x49b), region = 72 }
  0x53   : > { %s506_s4 = scalar_lea.hbm %s2356_s0, %s1264_s24 }
  0x54   : > { %s507_s20 = sshll.u32 %s506_s4, 4  ;;  %s508_s20 = int_to_ptr.hbm [resolvable:$true] %s507_s20 }
  0x55   : > { %1337 = dma.hbm_to_vmem [thread:$0]  (!%p1335_p10), %s508_s20, 1024, %s510_s6, %s498_s10, %s1912_s7, %s2358_s9, %s2357_s8  }
  0x56   : > { %1831 = dma.done.wait (%p305_p1), [#allocation4], 512  }
  0x57   : > { %1833 = vsyncadd (%p305_p1), [#allocation4], 4294966784 }
  0x58   : > { %1835 = dma.done.wait (%p305_p1), [#allocation7], 32  }
  0x59   : > { %1837 = vsyncadd (%p305_p1), [#allocation7], 4294967264 }
  0x5a   : > { %1839 = dma.done.wait (%p305_p1), [#allocation10], 528  }
  0x5b   : > { %1841 = vsyncadd (%p305_p1), [#allocation10], 4294966768 }
  0x5c   : > { %1843 = dma.done.wait (%p305_p1), [#allocation13], 32  }
  0x5d   : > { %1845 = vsyncadd (%p305_p1), [#allocation13], 4294967264 }
  0x5e   : > { %1847 = dma.done.wait (%p305_p1), [#allocation16], 16  }
  0x5f   : > { %1849 = vsyncadd (%p305_p1), [#allocation16], 4294967280  ;;  %s563_s2 = sand.u32 1, %s2044_s19   ;;  %s565_s4 = sand.u32 1, %s1876_s29  }
  0x60   : > { %s1214_s5 = sshll.u32 %s565_s4, 6  ;;  %s564_s6 = scalar_lea.sflag [#allocation4], %s563_s2 }
  0x61   : > { %s2190_s7 = scalar_lea.vmem [#allocation17], %s1214_s5 }
  0x62   : > { %1851 = dma.done.wait (%p2132_p13), %s564_s6, 1024  }
  0x63   : > { %1853 = vsyncadd (%p2132_p13), %s564_s6, 4294966272  ;;  %s2360_s8 = sld [smem:[#allocation28_spill]]  ;;  %s616_s9 = sand.u32 1, %s1864_s26  }
  0x64   : > { %s1215_s21 = sshll.u32 %s616_s9, 4  ;;  %s2361_s14 = sld [smem:[#allocation31_spill]] }
  0x65   : > { %s2362_s0 = sld [smem:[#allocation32_spill]]  ;;  %s2209_s15 = scalar_lea.vmem [#allocation18], %s1215_s21 }
  0x66   : > { %s2363_s10 = sld [smem:[#allocation27_spill]] }
  0x69   : > { %p619_p1 = scmp.lt.s32.totalorder %s2360_s8, 1 }
  0x6b   : > { %s2389_s8 = smov (!%p619_p1, %s2360_s8), 1 }
  0x6c   : > { %s1216_s19 = sshll.u32 %s2389_s8, 3  ;;  %p1218_p3 = scmp.ne.s32.totalorder %s2363_s10, 0 }
  0x6d   : > { %s622_s12 = scalar_lea.vmem %s2361_s14, %s1216_s19  ;;  %s2207_s20 = scalar_lea.vmem %s2362_s0, %s1216_s19 }
  0x6e   : > { %633 = sbr.rel (%p1218_p3) target bundleno = 1026 (0x402), region = 112  ;;  %s2364_s5 = sld [smem:[#allocation41_spill]] (!%p1218_p3) }
  0x73   : > { %v638_v0 = vld [vmem:[#allocation3 + $0x18] sm:$0xff]  ;;  %v637_v1 = vld [vmem:[#allocation3 + $0x10] sm:$0xff]  ;;  %v636_v2 = vld [vmem:[#allocation3 + $0x8] sm:$0xff]  ;;  %vm643_vm0 = vcmask 261120   ;;  %v1913_v37 = vmov -1.0   ;;  %v1914_v44 = vmov 32.0  }
  0x74   : > { %659 = vmatpush.msra.mxu0 %v638_v0  ;;  %v635_v3 = vld [vmem:[#allocation3] sm:$0xff]  ;;  %v748_v57 = vld [vmem:[#allocation11 + $0x10] sm:$0xff]  ;;  %v747_v58 = vld [vmem:[#allocation11 + $0x8] sm:$0xff]  ;;  %vm819_vm15 = vcmask 523264  }
  0x75   : > { %v634_v4 = vld [vmem:[%s622_s12] sm:$0xff]  ;;  %v746_v59 = vld [vmem:[#allocation11] sm:$0xff] }
  0x76   : > { %660 = vmatpush.msra.mxu0 %v637_v1  ;;  %v1466_v5 = vld [vmem:[#allocation6] ss:$0 sm:$0xff] }
  0x77   : > { %v749_v56 = vld [vmem:[#allocation11 + $0x18] sm:$0xff] }
  0x78   : > { %661 = vmatpush.msra.mxu0 %v636_v2  ;;  %769 = vmatpush.msra.mxu1 %v749_v56  ;;  %v1916_v56 = vmov 0.0  }
  0x7a   : > { %662 = vmatpush.msra.mxu0 %v635_v3  ;;  %770 = vmatpush.msra.mxu1 %v748_v57  ;;  %v1917_v57 = vmov 64.0  }
  0x7b   : > { %1219 = vmatmul.msk.f32.vlgmr.msra.gmra.mxu0 %vm643_vm0, %v634_v4 }
  0x7c   : > { %771 = vmatpush.msra.mxu1 %v747_v58 }
  0x7e   : > { %772 = vmatpush.msra.mxu1 %v746_v59 }
  0xf8   : > { %v664_v6 = vpop.f32.mrf.mxu0 }
  0xf9   : > { %v665_v7 = vadd.f32 %v1466_v5, %v664_v6  ;;  %v1467_v5 = vld [vmem:[#allocation8] ss:$0 sm:$0xff] }
  0xfb   : > { %v668_v8 = vmul.f32 0.70710677, %v665_v7  ;;  %v667_v40 = vmul.f32 0.5, %v665_v7 }
  0xfd   : > { %v671_v9 = vand.u32 2147483647, %v668_v8  ;;  %vm669_vm5 = vcmp.ge.f32.partialorder %v668_v8, 0.0  ;;  %v1468_v8 = vld [vmem:[#allocation9] ss:$0 sm:$0xff] }
  0xfe   : > { %v670_v38 = vsel %vm669_vm5, 1.0, %v1913_v37 }
  0xff   : > { %v672_v10 = vmul.f32 0.3275911, %v671_v9  ;;  %v698_v21 = vmul.f32 %v671_v9, %v671_v9 }
 0x101   : > { %v673_v11 = vadd.f32 1.0, %v672_v10  ;;  %v699_v25 = vsub.f32 0.0, %v698_v21 }
 0x103   : > { %1472 = vrcp.f32 %v673_v11  ;;  %v685_v15 = vand.u32 2147483648, %v673_v11  ;;  %v683_v17 = vand.u32 2147483647, %v673_v11  ;;  %vm679_vm2 = vweird.f32 %v673_v11 }
 0x104   : > { %v700_v28 = vmul.f32 1.442695, %v699_v25 }
 0x105   : > { %v686_v19 = vor.u32 1.1754944e-38, %v685_v15  ;;  %vm684_vm4 = vcmp.eq.f32.partialorder %v683_v17, 8.507059e+37 }
 0x106   : > { %1474 = vpow2.f32 %v700_v28 }
 0x107   : > { %1476 = vrcp.f32 %v1914_v44 }
 0x109   : > { %v1473_v12 = vpop.eup %1472 }
 0x10a   : > { %v675_v13 = vmul.f32 %v1473_v12, %v673_v11  ;;  %vm680_vm1 = vweird.f32 %v1473_v12  ;;  %v1915_v11 = vmov 0  }
 0x10b   : > { %vm681_vm3 = vmor %vm679_vm2, %vm680_vm1  ;;  %1464 = vset.pattern.permute.xlu1 %v1915_v11  ;;  %1465 = vset.pattern.permute.xlu0 %v1915_v11 }
 0x10c   : > { %v676_v14 = vsub.f32 1.0, %v675_v13  ;;  %v1475_v34 = vpop.eup %1474  ;;  %v1469_v13 = vld [vmem:[#allocation12] ss:$0 sm:$0xff] }
 0x10d   : > { %v1477_v45 = vpop.eup %1476 }
 0x10e   : > { %v677_v16 = vmul.f32 %v1473_v12, %v676_v14  ;;  %v713_v46 = vmul.f32 32.0, %v1477_v45  ;;  %vm717_vm6 = vweird.f32 %v1477_v45 }
 0x110   : > { %v678_v18 = vadd.f32 %v1473_v12, %v677_v16  ;;  %v714_v47 = vsub.f32 1.0, %v713_v46 }
 0x112   : > { %v682_v20 = vsel %vm681_vm3, %v1473_v12, %v678_v18  ;;  %v715_v48 = vmul.f32 %v1477_v45, %v714_v47  ;;  %v857_v12 = vld [vmem:[%s2207_s20] sm:$0xff] }
 0x113   : > { %v687_v22 = vsel %vm684_vm4, %v686_v19, %v682_v20  ;;  %861 = vperm.xlu1 %1464, %v857_v12  }
 0x114   : > { %v689_v23 = vmul.f32 1.0614054, %v687_v22  ;;  %v716_v49 = vadd.f32 %v1477_v45, %v715_v48 }
 0x116   : > { %v690_v24 = vadd.f32 -1.4531521, %v689_v23  ;;  %v718_v50 = vsel %vm717_vm6, %v1477_v45, %v716_v49  ;;  %vm893_vm6 = vcmask 519168  }
 0x118   : > { %v691_v26 = vmul.f32 %v690_v24, %v687_v22 }
 0x11a   : > { %v692_v27 = vadd.f32 1.4214138, %v691_v26 }
 0x11c   : > { %v693_v29 = vmul.f32 %v692_v27, %v687_v22 }
 0x11e   : > { %v694_v30 = vadd.f32 -0.28449672, %v693_v29 }
 0x120   : > { %v695_v31 = vmul.f32 %v694_v30, %v687_v22 }
 0x122   : > { %v696_v32 = vadd.f32 0.2548296, %v695_v31 }
 0x124   : > { %v697_v33 = vmul.f32 %v696_v32, %v687_v22 }
 0x126   : > { %v702_v35 = vmul.f32 %v1475_v34, %v697_v33 }
 0x128   : > { %v703_v36 = vsub.f32 1.0, %v702_v35 }
 0x12a   : > { %v704_v39 = vmul.f32 %v703_v36, %v670_v38 }
 0x12c   : > { %v705_v41 = vadd.f32 1.0, %v704_v39 }
 0x12e   : > { %v706_v42 = vmul.f32 %v705_v41, %v667_v40 }
 0x130   : > { %v709_v43 = vsel %vm643_vm0, %v706_v42, 0.0 }
 0x131   : > { %710 = vadd.xlane.f32.xlu0 %v709_v43 }
 0x1a4   : > { %v711_v51 = vpop.xlane.xlu0 %710 }
 0x1a5   : > { %v719_v52 = vmul.f32 %v718_v50, %v711_v51 }
 0x1a7   : > { %v720_v53 = vsub.f32 %v706_v42, %v719_v52  ;;  %v866_v52 = vld [vmem:[%s2364_s5] sm:$0xff] }
 0x1a8   : > { %886 = vmatpush.msra.mxu2 %v866_v52 }
 0x1a9   : > { %v721_v54 = vmul.f32 %v720_v53, %v720_v53 }
 0x1ab   : > { %v722_v55 = vsel %vm643_vm0, %v721_v54, 0.0 }
 0x1ac   : > { %723 = vadd.xlane.f32.xlu0 %v722_v55  ;;  %v862_v55 = vpop.permute.xlu1 %861 }
 0x21f   : > { %v724_v60 = vpop.xlane.xlu0 %723 }
 0x220   : > { %v725_v61 = vmul.f32 %v724_v60, %v718_v50 }
 0x222   : > { %v726_v62 = vadd.f32 1e-05, %v725_v61 }
 0x224   : > { %1478 = vrsqrt.f32 %v726_v62  ;;  %vm733_vm8 = vweird.f32 %v726_v62 }
 0x22a   : > { %v1479_v63 = vpop.eup %1478 }
 0x22b   : > { %v728_v0 = vmul.f32 %v1479_v63, %v726_v62  ;;  %vm734_vm7 = vweird.f32 %v1479_v63 }
 0x22c   : > { %vm735_vm9 = vmor %vm733_vm8, %vm734_vm7 }
 0x22d   : > { %v729_v1 = vmul.f32 %v1479_v63, %v728_v0 }
 0x22f   : > { %v730_v2 = vmul.f32 0.5, %v729_v1 }
 0x231   : > { %v731_v3 = vsub.f32 1.5, %v730_v2 }
 0x233   : > { %v732_v4 = vmul.f32 %v1479_v63, %v731_v3 }
 0x235   : > { %v736_v6 = vsel %vm735_vm9, %v1479_v63, %v732_v4 }
 0x236   : > { %v737_v7 = vmul.f32 %v736_v6, %v720_v53  ;;  %v858_v53 = vlaneseq }
 0x238   : > { %v741_v9 = vmul.f32 %v1467_v5, %v737_v7  ;;  %v859_v54 = vand.u32 127, %v858_v53 }
 0x23a   : > { %v745_v10 = vadd.f32 %v1468_v8, %v741_v9  ;;  %vm863_vm1 = vcmp.eq.s32.totalorder %v859_v54, %v862_v55 }
 0x23c   : > { %1220 = vmatmul.msk.f32.vlgmr.msra.gmra.mxu1 %vm643_vm0, %v745_v10  ;;  %vm867_vm0 = vcmask 64512  }
 0x2b9   : > { %v774_v14 = vpop.f32.mrf.mxu1 }
 0x2ba   : > { %v775_v15 = vadd.f32 %v1469_v13, %v774_v14  ;;  %v1470_v14 = vld [vmem:[#allocation14] ss:$0 sm:$0xff] }
 0x2bc   : > { %v778_v16 = vmul.f32 0.70710677, %v775_v15  ;;  %v777_v48 = vmul.f32 0.5, %v775_v15 }
 0x2be   : > { %v781_v17 = vand.u32 2147483647, %v778_v16  ;;  %vm779_vm14 = vcmp.ge.f32.partialorder %v778_v16, 0.0  ;;  %v1471_v16 = vld [vmem:[#allocation15] ss:$0 sm:$0xff] }
 0x2bf   : > { %v780_v46 = vsel %vm779_vm14, 1.0, %v1913_v37  ;;  %v1221_v37 = vsel %vm863_vm1, 1.0, %v1916_v56 }
 0x2c0   : > { %v782_v18 = vmul.f32 0.3275911, %v781_v17  ;;  %v808_v29 = vmul.f32 %v781_v17, %v781_v17  ;;  %1222 = vmatmul.msk.f32.vlgmr.msra.gmra.mxu2 %vm867_vm0, %v1221_v37 }
 0x2c2   : > { %v783_v19 = vadd.f32 1.0, %v782_v18  ;;  %v809_v33 = vsub.f32 0.0, %v808_v29 }
 0x2c4   : > { %1480 = vrcp.f32 %v783_v19  ;;  %v795_v23 = vand.u32 2147483648, %v783_v19  ;;  %v793_v25 = vand.u32 2147483647, %v783_v19  ;;  %vm789_vm11 = vweird.f32 %v783_v19 }
 0x2c5   : > { %v810_v36 = vmul.f32 1.442695, %v809_v33 }
 0x2c6   : > { %v796_v27 = vor.u32 1.1754944e-38, %v795_v23  ;;  %vm794_vm13 = vcmp.eq.f32.partialorder %v793_v25, 8.507059e+37 }
 0x2c7   : > { %1482 = vpow2.f32 %v810_v36 }
 0x2c8   : > { %1484 = vrcp.f32 %v1917_v57 }
 0x2ca   : > { %v1481_v20 = vpop.eup %1480 }
 0x2cb   : > { %v785_v21 = vmul.f32 %v1481_v20, %v783_v19  ;;  %vm790_vm10 = vweird.f32 %v1481_v20 }
 0x2cc   : > { %vm791_vm12 = vmor %vm789_vm11, %vm790_vm10 }
 0x2cd   : > { %v786_v22 = vsub.f32 1.0, %v785_v21  ;;  %v1483_v43 = vpop.eup %1482 }
 0x2ce   : > { %v1485_v58 = vpop.eup %1484 }
 0x2cf   : > { %v787_v24 = vmul.f32 %v1481_v20, %v786_v22  ;;  %v824_v59 = vmul.f32 64.0, %v1485_v58  ;;  %vm828_vm2 = vweird.f32 %v1485_v58 }
 0x2d1   : > { %v788_v26 = vadd.f32 %v1481_v20, %v787_v24  ;;  %v825_v60 = vsub.f32 1.0, %v824_v59 }
 0x2d3   : > { %v792_v28 = vsel %vm791_vm12, %v1481_v20, %v788_v26  ;;  %v826_v61 = vmul.f32 %v1485_v58, %v825_v60 }
 0x2d4   : > { %v797_v30 = vsel %vm794_vm13, %v796_v27, %v792_v28 }
 0x2d5   : > { %v799_v31 = vmul.f32 1.0614054, %v797_v30  ;;  %v827_v62 = vadd.f32 %v1485_v58, %v826_v61 }
 0x2d7   : > { %v800_v32 = vadd.f32 -1.4531521, %v799_v31  ;;  %v829_v63 = vsel %vm828_vm2, %v1485_v58, %v827_v62 }
 0x2d9   : > { %v801_v34 = vmul.f32 %v800_v32, %v797_v30 }
 0x2db   : > { %v802_v35 = vadd.f32 1.4214138, %v801_v34 }
 0x2dd   : > { %v803_v38 = vmul.f32 %v802_v35, %v797_v30 }
 0x2df   : > { %v804_v39 = vadd.f32 -0.28449672, %v803_v38 }
 0x2e1   : > { %v805_v40 = vmul.f32 %v804_v39, %v797_v30 }
 0x2e3   : > { %v806_v41 = vadd.f32 0.2548296, %v805_v40 }
 0x2e5   : > { %v807_v42 = vmul.f32 %v806_v41, %v797_v30 }
 0x2e7   : > { %v812_v44 = vmul.f32 %v1483_v43, %v807_v42 }
 0x2e9   : > { %v813_v45 = vsub.f32 1.0, %v812_v44 }
 0x2eb   : > { %v814_v47 = vmul.f32 %v813_v45, %v780_v46 }
 0x2ed   : > { %v815_v49 = vadd.f32 1.0, %v814_v47 }
 0x2ef   : > { %v816_v50 = vmul.f32 %v815_v49, %v777_v48 }
 0x2f1   : > { %v820_v51 = vsel %vm819_vm15, %v816_v50, 0.0 }
 0x2f2   : > { %821 = vadd.xlane.f32.xlu1 %v820_v51 }
 0x343   : > { %v888_v20 = vpop.f32.mrf.mxu2 }
 0x365   : > { %v822_v0 = vpop.xlane.xlu1 %821 }
 0x366   : > { %v830_v1 = vmul.f32 %v829_v63, %v822_v0 }
 0x368   : > { %v831_v2 = vsub.f32 %v816_v50, %v830_v1 }
 0x36a   : > { %v832_v3 = vmul.f32 %v831_v2, %v831_v2 }
 0x36c   : > { %v833_v4 = vsel %vm819_vm15, %v832_v3, 0.0 }
 0x36d   : > { %834 = vadd.xlane.f32.xlu2 %v833_v4 }
 0x3e0   : > { %v835_v5 = vpop.xlane.xlu2 %834 }
 0x3e1   : > { %v836_v6 = vmul.f32 %v835_v5, %v829_v63 }
 0x3e3   : > { %v837_v7 = vadd.f32 1e-05, %v836_v6 }
 0x3e5   : > { %1486 = vrsqrt.f32 %v837_v7  ;;  %vm844_vm4 = vweird.f32 %v837_v7 }
 0x3eb   : > { %v1487_v8 = vpop.eup %1486 }
 0x3ec   : > { %v839_v9 = vmul.f32 %v1487_v8, %v837_v7  ;;  %vm845_vm3 = vweird.f32 %v1487_v8 }
 0x3ed   : > { %vm846_vm5 = vmor %vm844_vm4, %vm845_vm3 }
 0x3ee   : > { %v840_v10 = vmul.f32 %v1487_v8, %v839_v9 }
 0x3f0   : > { %v841_v11 = vmul.f32 0.5, %v840_v10 }
 0x3f2   : > { %v842_v12 = vsub.f32 1.5, %v841_v11 }
 0x3f4   : > { %v843_v13 = vmul.f32 %v1487_v8, %v842_v12 }
 0x3f6   : > { %v847_v15 = vsel %vm846_vm5, %v1487_v8, %v843_v13 }
 0x3f7   : > { %v848_v17 = vmul.f32 %v847_v15, %v831_v2 }
 0x3f9   : > { %v852_v18 = vmul.f32 %v1470_v14, %v848_v17 }
 0x3fb   : > { %v856_v19 = vadd.f32 %v1471_v16, %v852_v18 }
 0x3fd   : > { %v891_v21 = vsub.f32 %v856_v19, %v888_v20 }
 0x3ff   : > { %v892_v22 = vpack.c.bf16 %v891_v21, %v891_v21 }
 0x401   : > { %894 = vst.msk [vmem:[#allocation2] sm:$0xf] %vm893_vm6, %v892_v22 }
 0x402 PF: > { %v1250_v23 = vld [vmem:[%s2190_s7 + $0x30] sm:$0xf]  ;;  %v1272_v24 = vld [vmem:[%s2190_s7 + $0x34] sm:$0xf0]  ;;  %v1271_v25 = vld [vmem:[%s2190_s7 + $0x34] sm:$0xf] }
 0x403   : > { %v1251_v26 = vor.u32 %v1272_v24, %v1250_v23  ;;  %v1252_v27 = vld [vmem:[%s2190_s7 + $0x38] sm:$0xf0]  ;;  %v1242_v28 = vld [vmem:[%s2190_s7 + $0x20] sm:$0xf]  ;;  %v1270_v29 = vld [vmem:[%s2190_s7 + $0x24] sm:$0xf0] }
 0x404   : > { %v1255_v30 = vor.u32 %v1271_v25, %v1252_v27  ;;  %v1269_v31 = vld [vmem:[%s2190_s7 + $0x24] sm:$0xf]  ;;  %v1244_v32 = vld [vmem:[%s2190_s7 + $0x28] sm:$0xf0]  ;;  %v1243_v33 = vor.u32 %v1270_v29, %v1242_v28  ;;  %v1234_v35 = vld [vmem:[%s2190_s7 + $0x10] sm:$0xf] }
 0x405   : > { %962 = vmatpush.bf16.msra.mxu0 %v1251_v26  ;;  %v1247_v34 = vor.u32 %v1269_v31, %v1244_v32  ;;  %v1268_v36 = vld [vmem:[%s2190_s7 + $0x14] sm:$0xf0]  ;;  %v1267_v38 = vld [vmem:[%s2190_s7 + $0x14] sm:$0xf]  ;;  %v1236_v39 = vld [vmem:[%s2190_s7 + $0x18] sm:$0xf0] }
 0x406   : > { %975 = vmatpush.bf16.msra.mxu1 %v1255_v30  ;;  %v1235_v40 = vor.u32 %v1268_v36, %v1234_v35  ;;  %s2365_s6 = sld [smem:[#allocation27_spill]]  ;;  %v1239_v41 = vor.u32 %v1267_v38, %v1236_v39  ;;  %v1226_v42 = vld [vmem:[%s2190_s7] sm:$0xf]  ;;  %v1266_v43 = vld [vmem:[%s2190_s7 + $0x4] sm:$0xf0]  ;;  %vm954_vm7 = vcmask 523264  }
 0x407   : > { %s2366_s8 = sld [smem:[#allocation28_spill]]  ;;  %v1265_v44 = vld [vmem:[%s2190_s7 + $0x4] sm:$0xf]  ;;  %v1228_v45 = vld [vmem:[%s2190_s7 + $0x8] sm:$0xf0]  ;;  %v1227_v46 = vor.u32 %v1266_v43, %v1226_v42  ;;  %s1002_s5 = sshll.u32 %s2209_s15, 4  ;;  %s1003_s5 = int_to_ptr.vmem [resolvable:$true] %s1002_s5 }
 0x408   : > { %v1231_v47 = vor.u32 %v1265_v44, %v1228_v45  ;;  %v895_v48 = vld [vmem:[#allocation2] sm:$0xf]  ;;  %s2367_s7 = sld [smem:[#allocation43_spill]] }
 0x409   : > { %963 = vmatpush.bf16.msra.mxu0 %v1243_v33  ;;  %s2368_s2 = sld [smem:[#allocation44_spill]] }
 0x40a   : > { %976 = vmatpush.bf16.msra.mxu1 %v1247_v34 }
 0x40c   : > { %s1223_s21 = sshll.u32 %s2365_s6, 8  ;;  %s1259_s19 = sshll.u32 %s2365_s6, 1 }
 0x40d   : > { %964 = vmatpush.bf16.msra.mxu0 %v1235_v40  ;;  %s1260_s23 = sshll.u32 %s2366_s8, 2  ;;  %s905_s3 = sshra.s32 %s1223_s21, 7 }
 0x40e   : > { %977 = vmatpush.bf16.msra.mxu1 %v1239_v41  ;;  %s998_s14 = sadd.s32 %s1260_s23, %s1259_s19  ;;  %s907_s1 = scalar_lea.vmem %s2367_s7, %s905_s3 }
 0x40f   : > { %s1261_s0 = sshll.u32 %s998_s14, 3  ;;  %v908_v49 = vld [vmem:[%s907_s1] sm:$0x3]  ;;  %s987_s8 = scalar_lea.sflag [#allocation5], %s616_s9 }
 0x410   : > { %s1000_s4 = scalar_lea.hbm %s2368_s2, %s1261_s0  ;;  %v910_v50 = vperm.slane %v908_v49, 0  ;;  %v911_v51 = vperm.slane %v908_v49, 1  ;;  %s1778_s14 = scalar_lea.hbm %s2368_s2, 64 }
 0x411   : > { %965 = vmatpush.bf16.msra.mxu0 %v1227_v46  ;;  %s1004_s6 = sshll.u32 %s1000_s4, 4  ;;  %s1005_s6 = int_to_ptr.hbm [resolvable:$true] %s1004_s6 }
 0x412   : > { %978 = vmatpush.bf16.msra.mxu1 %v1231_v47  ;;  %s1772_s21 = sshra.s32 %s1005_s6, 4  ;;  %s1773_s21 = int_to_ptr.hbm [resolvable:$true] %s1772_s21 }
 0x413   : > { %s1774_s19 = scalar_lea.hbm %s1773_s21, 16  ;;  %p1779_p0 = scmp.lt.s32.totalorder %s1773_s21, %s2368_s2 }
 0x414   : > { %1256 = vmatmul.msk.bf16.vlgmr.msra.gmra.mxu0 %vm954_vm7, %v895_v48  ;;  %p1775_p11 = scmp.ne.s32.totalorder %s1773_s21, %s1774_s19  ;;  %p1780_p2 = scmp.lt.s32.totalorder %s1778_s14, %s1774_s19 }
 0x415   : > { %1257 = vmatmul.msk.bf16.vlgmr.msra.gmra.mxu1 %vm954_vm7, %v895_v48 }
 0x416   : > { %p1776_p12 = pnand %p1775_p11, %p2147_p6  ;;  %p1781_p4 = por %p1780_p2, %p1779_p0 }
 0x418   : > { %p1777_p13 = pneg %p1776_p12 }
 0x41a   : > { %p1782_p5 = pnand %p1781_p4, %p1777_p13 }
 0x491   : > { %v967_v52 = vpop.f32.mrf.mxu0 }
 0x492   : > { %v968_v53 = vadd.f32 %v967_v52, %v910_v50  ;;  %v980_v54 = vpop.f32.mrf.mxu1 }
 0x493   : > { %v981_v55 = vadd.f32 %v980_v54, %v911_v51 }
 0x494   : > { %984 = vst [vmem:[%s2209_s15] sm:$0xff] %v968_v53 }
 0x495   : > { %985 = vst [vmem:[%s2209_s15 + $0x8] sm:$0xff] %v981_v55 }
 0x496   : > { %1785 = shalt.err (!%p1782_p5)
}
 0x497   : > { %1307 = dma.vmem_to_hbm [thread:$0]  (%p2147_p6), %s1003_s5, 256, %s1005_s6, %s987_s8  }
 0x499   : > { %v969_v56 = vpop.f32.mrf.mxu0 }
 0x49a   : > { %v982_v37 = vpop.f32.mrf.mxu1 }
 0x49b PF: > { %s2369_s9 = sld [smem:[#allocation26_spill]]  ;;  %p1359_p7 = scmp.ge.s32.totalorder %s1900_s18, 2 }
 0x49d   : > { %p1339_p8 = pnand %p1359_p7, %p2153_p9 }
 0x49f   : > { %p1340_p10 = pneg %p1339_p8 }
 0x4a1   : > { %s1016_s15 = sand.u32 1, %s2369_s9  }
 0x4a2   : > { %s1017_s7 = scalar_lea.sflag [#allocation5], %s1016_s15 }
 0x4a3   : > { %1855 = dma.done.wait (%p1340_p10), %s1017_s7, 256  }
 0x4a4   : > { %1857 = vsyncadd (%p1340_p10), %s1017_s7, 4294967040  ;;  %s31_s18 = sadd.s32 1, %s1900_s18   ;;  %s2370_s11 = smov %s2383_s25 }
 0x4a5   : > { %p28_p1 = scmp.ge.s32.totalorder %s31_s18, 6   ;;  %s2371_s1 = sld [smem:[#allocation30_spill]] }
 0x4a6   : > { %s2372_s25 = smov %s1864_s26  ;;  %s2373_s26 = smov %s1868_s27 }
 0x4a7   : > { %s2374_s27 = smov %s2145_s28  ;;  %s2375_s28 = smov %s1876_s29 }
 0x4a8   : > { %s2376_s29 = smov %s1880_s30  ;;  %s2377_s30 = smov %s2128_s22 }
 0x4a9   : > { %s2378_s14 = smov %s1892_s16  ;;  %s2379_s15 = smov %s1896_s17 }
 0x4aa   : > { %s2380_s16 = smov %s2370_s11  ;;  %30 = sbr.rel (!%p28_p1) target bundleno = 27 (0x1b), region = 159 }
 0x4ab   : > { %s2381_s17 = smov %s2371_s1 }
 0x4af   :  { %1023 = vsyncpa [#allocation4], 1 }
 0x4b0   :  { %1025 = vsyncpa [#allocation4 + $0x1], 1 }
 0x4b1   :  { %1026 = vsyncpa [#allocation7], 1 }
 0x4b2   :  { %1027 = vsyncpa [#allocation10], 1 }
 0x4b3   :  { %1028 = vsyncpa [#allocation13], 1 }
 0x4b4   :  { %1029 = vsyncpa [#allocation16], 1 }
 0x4b5   :  { %1030 = vsyncpa [#allocation5], 1 }
 0x4b6   :  { %1032 = vsyncpa [#allocation5 + $0x1], 1 }

// kernel: tpu_custom_call.1
= control target key start
LH: loop header
LB: loop body
LE: loop exit
PB: predicated region body
PF: predicated region fallthrough
CT: control target
= control target key end

     0   :  { %s2301_s0 = inlined_call_operand.vmem [shape: f32[16,32], index: 0, kind: input, shape index: {}]   ;;  %s2302_s1 = inlined_call_operand.vmem [shape: s32[16,1], index: 1, kind: input, shape index: {}]   ;;  %s2303_s2 = inlined_call_operand.hbm [shape: f32[32,32], index: 2, kind: input, shape index: {}]   ;;  %s2304_s3 = inlined_call_operand.hbm [shape: f32[1,32], index: 3, kind: input, shape index: {}]   ;;  %s2305_s4 = inlined_call_operand.hbm [shape: f32[1,32], index: 4, kind: input, shape index: {}]   ;;  %s2306_s5 = inlined_call_operand.hbm [shape: f32[1,32], index: 5, kind: input, shape index: {}]   ;;  %s2307_s6 = inlined_call_operand.hbm [shape: f32[32,64], index: 6, kind: input, shape index: {}]   ;;  %s2308_s7 = inlined_call_operand.hbm [shape: f32[1,64], index: 7, kind: input, shape index: {}]   ;;  %s2309_s8 = inlined_call_operand.hbm [shape: f32[1,64], index: 8, kind: input, shape index: {}]   ;;  %s2310_s9 = inlined_call_operand.hbm [shape: f32[1,64], index: 9, kind: input, shape index: {}]   ;;  %s2311_s10 = inlined_call_operand.vmem [shape: f32[8,64], index: 10, kind: input, shape index: {}]   ;;  %s2312_s11 = inlined_call_operand.hbm [shape: bf16[64,512], index: 11, kind: input, shape index: {}]   ;;  %s2313_s12 = inlined_call_operand.vmem [shape: f32[1,512], index: 12, kind: input, shape index: {}]   ;;  %s2314_s13 = inlined_call_operand.hbm [shape: f32[16,512], index: 13, kind: output, shape index: {}]  }
   0x1   :  { %2322 = sst [smem:[#allocation31_spill]] %s2301_s0 }
   0x2   :  { %2323 = sst [smem:[#allocation32_spill]] %s2302_s1 }
   0x3   :  { %2324 = sst [smem:[#allocation33_spill]] %s2303_s2 }
   0x4   :  { %2325 = sst [smem:[#allocation34_spill]] %s2304_s3 }
   0x5   :  { %2326 = sst [smem:[#allocation35_spill]] %s2305_s4 }
   0x6   :  { %2327 = sst [smem:[#allocation36_spill]] %s2306_s5 }
   0x7   :  { %2328 = sst [smem:[#allocation37_spill]] %s2307_s6 }
   0x8   :  { %2329 = sst [smem:[#allocation38_spill]] %s2308_s7 }
   0x9   :  { %2330 = sst [smem:[#allocation39_spill]] %s2309_s8 }
   0xa   :  { %2331 = sst [smem:[#allocation40_spill]] %s2310_s9 }
   0xb   :  { %2332 = sst [smem:[#allocation41_spill]] %s2311_s10 }
   0xc   :  { %2333 = sst [smem:[#allocation42_spill]] %s2312_s11 }
   0xd   :  { %2334 = sst [smem:[#allocation43_spill]] %s2313_s12 }
   0xe   :  { %2335 = sst [smem:[#allocation44_spill]] %s2314_s13 }
   0xf   :  { %18 = vsyncpa [#allocation4], 0 }
  0x10   :  { %19 = vsyncpa [#allocation7], 0 }
  0x11   :  { %20 = vsyncpa [#allocation10], 0 }
  0x12   :  { %21 = vsyncpa [#allocation13], 0 }
  0x13   :  { %22 = vsyncpa [#allocation16], 0 }
  0x14   :  { %23 = vsyncpa [#allocation5], 0 }
  0x15   :  { %25 = vsyncpa [#allocation5 + $0x1], 0  ;;  %s1988_s25 = smov 0   ;;  %s1990_s26 = smov 0  }
  0x16   :  { %s1992_s27 = smov 0   ;;  %s1994_s28 = smov 0  }
  0x17   :  { %s1996_s29 = smov 0   ;;  %s1998_s30 = smov 0  }
  0x18   :  { %s2000_s14 = smov 0   ;;  %s2002_s15 = smov 0  }
  0x19   :  { %s2004_s16 = smov 0   ;;  %s2006_s17 = smov 0  }
  0x1a   :  { %s2008_s18 = smov 0  }
  0x1b LB: > { %2336 = sst [smem:[#allocation26_spill]] %s1860_s25  ;;  %s2044_s19 = sadd.s32 4294967295, %s1900_s18   ;;  %s1900_s18 = sphi %s2008_s18, %s31_s18   ;;  %s1896_s17 = sphi %s2006_s17, %s2381_s17   ;;  %s1892_s16 = sphi %s2004_s16, %s2380_s16   ;;  %s1888_s15 = sphi %s2002_s15, %s2379_s15   ;;  %s1884_s14 = sphi %s2000_s14, %s2378_s14   ;;  %s1880_s30 = sphi %s1998_s30, %s2377_s30   ;;  %s1876_s29 = sphi %s1996_s29, %s2376_s29   ;;  %s1872_s28 = sphi %s1994_s28, %s2375_s28   ;;  %s1868_s27 = sphi %s1992_s27, %s2374_s27   ;;  %s1864_s26 = sphi %s1990_s26, %s2373_s26   ;;  %s1860_s25 = sphi %s1988_s25, %s2372_s25  }
  0x1c   : > { %2337 = sst [smem:[#allocation27_spill]] %s1884_s14  ;;  %p1192_p0 = scmp.ge.s32.totalorder %s1900_s18, 1 }
  0x1d   : > { %2338 = sst [smem:[#allocation28_spill]] %s1888_s15  ;;  %p305_p1 = scmp.eq.s32.totalorder %s2044_s19, 0 }
  0x1e   : > { %p364_p2 = scmp.lt.s32.totalorder %s1900_s18, 5  ;;  %s2339_s2 = sld [smem:[#allocation33_spill]] }
  0x1f   : > { %s1902_s24 = smov [#allocation3]   ;;  %s2343_s3 = sld [smem:[#allocation34_spill]] }
  0x20   : > { %p2052_p3 = pnand %p1192_p0, %p364_p2  ;;  %s377_s13 = sshll.u32 %s1902_s24, 4  ;;  %s378_s13 = int_to_ptr.vmem [resolvable:$true] %s377_s13 }
  0x21   : > { %s2319_s21 = smov 128   ;;  %s1905_s24 = smov [#allocation6]  }
  0x22   : > { %s2340_s23 = scalar_select %p2052_p3, 1, 0 }
  0x23   : > { %p1309_p4 = pneg %p2052_p3  ;;  %s392_s1 = sshll.u32 %s1905_s24, 4  ;;  %s393_s1 = int_to_ptr.vmem [resolvable:$true] %s392_s1 }
  0x24   : > { %s375_s22 = sshll.u32 %s2339_s2, 4  ;;  %2341 = sst [smem:[#allocation29_spill]] %s2340_s23  ;;  %s376_s22 = int_to_ptr.hbm [resolvable:$true] %s375_s22 }
  0x25   : > { %p2060_p5 = pnand %p1309_p4, %p305_p1  ;;  %s390_s20 = sshll.u32 %s2343_s3, 4  ;;  %s391_s20 = int_to_ptr.hbm [resolvable:$true] %s390_s20 }
  0x26   : > { %s2320_s2 = smov 8   ;;  %s2344_s5 = sld [smem:[#allocation36_spill]] }
  0x27   : > { %1312 = dma.hbm_to_vmem [thread:$0]  (!%p2060_p5), %s376_s22, 512, %s378_s13, [#allocation4], %s2319_s21, %s2319_s21, %s2320_s2  }
  0x28   : > { %1315 = dma.hbm_to_vmem [thread:$0]  (!%p2060_p5), %s391_s20, 16, %s393_s1, [#allocation7]  }
  0x29   : > { %s2345_s7 = sld [smem:[#allocation38_spill]]  ;;  %s1906_s11 = smov [#allocation9]  }
  0x2a   : > { %s416_s25 = sshll.u32 %s1906_s11, 4  ;;  %s1907_s13 = smov [#allocation12]   ;;  %s417_s25 = int_to_ptr.vmem [resolvable:$true] %s416_s25 }
  0x2b   : > { %s442_s22 = sshll.u32 %s1907_s13, 4  ;;  %s2346_s4 = sld [smem:[#allocation35_spill]]  ;;  %s443_s22 = int_to_ptr.vmem [resolvable:$true] %s442_s22 }
  0x2c   : > { %s414_s23 = sshll.u32 %s2344_s5, 4  ;;  %s2347_s6 = sld [smem:[#allocation37_spill]]  ;;  %s415_s23 = int_to_ptr.hbm [resolvable:$true] %s414_s23 }
  0x2d   : > { %1321 = dma.hbm_to_vmem [thread:$0]  (!%p2060_p5), %s415_s23, 16, %s417_s25, [#allocation10]  }
  0x2e   : > { %s1908_s11 = smov [#allocation8]   ;;  %s1909_s25 = smov [#allocation11]  }
  0x2f   : > { %s440_s3 = sshll.u32 %s2345_s7, 4  ;;  %s404_s14 = sshll.u32 %s1908_s11, 4  ;;  %s441_s3 = int_to_ptr.hbm [resolvable:$true] %s440_s3  ;;  %s405_s14 = int_to_ptr.vmem [resolvable:$true] %s404_s14 }
  0x30   : > { %1327 = dma.hbm_to_vmem [thread:$0]  (!%p2060_p5), %s441_s3, 16, %s443_s22, [#allocation13]  }
  0x31   : > { %s402_s24 = sshll.u32 %s2346_s4, 4  ;;  %s427_s23 = sshll.u32 %s1909_s25, 4  ;;  %s403_s24 = int_to_ptr.hbm [resolvable:$true] %s402_s24  ;;  %s428_s23 = int_to_ptr.vmem [resolvable:$true] %s427_s23 }
  0x32   : > { %s425_s10 = sshll.u32 %s2347_s6, 4  ;;  %s2348_s8 = sld [smem:[#allocation39_spill]]  ;;  %s426_s10 = int_to_ptr.hbm [resolvable:$true] %s425_s10 }
  0x33   : > { %1318 = dma.hbm_to_vmem [thread:$0]  (!%p2060_p5), %s403_s24, 16, %s405_s14, [#allocation7]  }
  0x34   : > { %1324 = dma.hbm_to_vmem [thread:$0]  (!%p2060_p5), %s426_s10, 512, %s428_s23, [#allocation10], %s2319_s21, %s2319_s21, %s2320_s2  }
  0x35   : > { %s2349_s9 = sld [smem:[#allocation40_spill]]  ;;  %s1910_s1 = smov [#allocation14]  }
  0x36   : > { %s454_s20 = sshll.u32 %s1910_s1, 4  ;;  %s1911_s11 = smov [#allocation15]   ;;  %s455_s20 = int_to_ptr.vmem [resolvable:$true] %s454_s20 }
  0x37   : > { %s466_s14 = sshll.u32 %s1911_s11, 4  ;;  %s1191_s10 = sadd.s32 4294967294, %s1900_s18   ;;  %s467_s14 = int_to_ptr.vmem [resolvable:$true] %s466_s14 }
  0x38   : > { %s452_s3 = sshll.u32 %s2348_s8, 4  ;;  %s40_s25 = sadd.s32 1, %s1892_s16  ;;  %s453_s3 = int_to_ptr.hbm [resolvable:$true] %s452_s3 }
  0x39   : > { %1330 = dma.hbm_to_vmem [thread:$0]  (!%p2060_p5), %s453_s3, 16, %s455_s20, [#allocation13]  }
  0x3a   : > { %p41_p6 = scmp.ge.s32.totalorder %s40_s25, 2  ;;  %s43_s23 = sadd.s32 1, %s1896_s17 }
  0x3b   : > { %s464_s24 = sshll.u32 %s2349_s9, 4  ;;  %s291_s13 = sadd.s32 1, %s1880_s30  ;;  %s465_s24 = int_to_ptr.hbm [resolvable:$true] %s464_s24 }
  0x3c   : > { %1333 = dma.hbm_to_vmem [thread:$0]  (!%p2060_p5), %s465_s24, 16, %s467_s14, [#allocation16]  }
  0x3d   : > { %p298_p7 = scmp.ne.s32.totalorder %s1880_s30, %s1876_s29  ;;  %s2383_s25 = smov (%p41_p6, %s40_s25), 0 }
  0x3e   : > { %s2385_s23 = smov (!%p41_p6, %s43_s23), %s1896_s17  ;;  %s2350_s0 = sld [smem:[#allocation26_spill]] }
  0x3f   : > { %s288_s12 = ssub.s32 %s1892_s16, %s2383_s25  ;;  %p299_p8 = scmp.eq.s32.totalorder %s1900_s18, 0 }
  0x40   : > { %p45_p9 = scmp.ge.s32.totalorder %s2385_s23, 2  ;;  %p289_p10 = scmp.eq.s32.totalorder %s288_s12, 0 }
  0x41   : > { %p2119_p11 = por %p299_p8, %p298_p7  ;;  %p304_p12 = scmp.ne.s32.totalorder %s1876_s29, %s1872_s28 }
  0x42   : > { %s2387_s23 = smov (%p45_p9, %s2385_s23), 0  ;;  %s340_s20 = sadd.s32 1, %s1868_s27 }
  0x43   : > { %2352 = sst [smem:[#allocation30_spill]] %s2387_s23  ;;  %p2132_p13 = por %p305_p1, %p304_p12 }
  0x44   : > { %s2128_s22 = scalar_select %p289_p10, %s1880_s30, %s291_s13  }
  0x45   : > { %s335_s24 = ssub.s32 %s1896_s17, %s2387_s23  ;;  %p350_p2 = scmp.ne.s32.totalorder %s1868_s27, %s1864_s26 }
  0x46   : > { %s337_s1 = sor.u32 %s335_s24, %s288_s12  ;;  %p351_p4 = scmp.eq.s32.totalorder %s2044_s19, 3 }
  0x47   : > { %p338_p0 = scmp.eq.s32.totalorder %s337_s1, 0  ;;  %p356_p5 = scmp.ne.s32.totalorder %s1864_s26, %s2350_s0 }
  0x48   : > { %p2147_p6 = por %p351_p4, %p350_p2  ;;  %p357_p7 = scmp.eq.s32.totalorder %s1191_s10, 3 }
  0x49   : > { %s2145_s28 = scalar_select %p338_p0, %s1868_s27, %s340_s20  }
  0x4a   : > { %p1350_p8 = scmp.lt.s32.totalorder %s1900_s18, 4  ;;  %s497_s14 = sand.u32 1, %s1900_s18  }
  0x4b   : > { %p2153_p9 = por %p357_p7, %p356_p5  ;;  %s499_s12 = sand.u32 1, %s1880_s30  }
  0x4c   : > { %s1264_s24 = sshll.u32 %s1892_s16, 3  ;;  %s1202_s1 = sshll.u32 %s499_s12, 6 }
  0x4d   : > { %s2356_s0 = sld [smem:[#allocation42_spill]]  ;;  %s501_s5 = scalar_lea.vmem [#allocation17], %s1202_s1 }
  0x4e   : > { %s509_s6 = sshll.u32 %s501_s5, 4  ;;  %p1335_p10 = pnand %p1350_p8, %p2119_p11  ;;  %s510_s6 = int_to_ptr.vmem [resolvable:$true] %s509_s6 }
  0x4f   : > { %s498_s10 = scalar_lea.sflag [#allocation4], %s497_s14  ;;  %s1912_s7 = smov 256  }
  0x50   : > { %s2357_s8 = smov 8   ;;  %s2358_s9 = smov 128  }
  0x51   : > { %521 = sbr.rel (%p2052_p3) target bundleno = 1179 (0x49b), region = 72 }
  0x53   : > { %s506_s4 = scalar_lea.hbm %s2356_s0, %s1264_s24 }
  0x54   : > { %s507_s20 = sshll.u32 %s506_s4, 4  ;;  %s508_s20 = int_to_ptr.hbm [resolvable:$true] %s507_s20 }
  0x55   : > { %1337 = dma.hbm_to_vmem [thread:$0]  (!%p1335_p10), %s508_s20, 1024, %s510_s6, %s498_s10, %s1912_s7, %s2358_s9, %s2357_s8  }
  0x56   : > { %1831 = dma.done.wait (%p305_p1), [#allocation4], 512  }
  0x57   : > { %1833 = vsyncadd (%p305_p1), [#allocation4], 4294966784 }
  0x58   : > { %1835 = dma.done.wait (%p305_p1), [#allocation7], 32  }
  0x59   : > { %1837 = vsyncadd (%p305_p1), [#allocation7], 4294967264 }
  0x5a   : > { %1839 = dma.done.wait (%p305_p1), [#allocation10], 528  }
  0x5b   : > { %1841 = vsyncadd (%p305_p1), [#allocation10], 4294966768 }
  0x5c   : > { %1843 = dma.done.wait (%p305_p1), [#allocation13], 32  }
  0x5d   : > { %1845 = vsyncadd (%p305_p1), [#allocation13], 4294967264 }
  0x5e   : > { %1847 = dma.done.wait (%p305_p1), [#allocation16], 16  }
  0x5f   : > { %1849 = vsyncadd (%p305_p1), [#allocation16], 4294967280  ;;  %s563_s2 = sand.u32 1, %s2044_s19   ;;  %s565_s4 = sand.u32 1, %s1876_s29  }
  0x60   : > { %s1214_s5 = sshll.u32 %s565_s4, 6  ;;  %s564_s6 = scalar_lea.sflag [#allocation4], %s563_s2 }
  0x61   : > { %s2190_s7 = scalar_lea.vmem [#allocation17], %s1214_s5 }
  0x62   : > { %1851 = dma.done.wait (%p2132_p13), %s564_s6, 1024  }
  0x63   : > { %1853 = vsyncadd (%p2132_p13), %s564_s6, 4294966272  ;;  %s2360_s8 = sld [smem:[#allocation28_spill]]  ;;  %s616_s9 = sand.u32 1, %s1864_s26  }
  0x64   : > { %s1215_s21 = sshll.u32 %s616_s9, 4  ;;  %s2361_s14 = sld [smem:[#allocation31_spill]] }
  0x65   : > { %s2362_s0 = sld [smem:[#allocation32_spill]]  ;;  %s2209_s15 = scalar_lea.vmem [#allocation18], %s1215_s21 }
  0x66   : > { %s2363_s10 = sld [smem:[#allocation27_spill]] }
  0x69   : > { %p619_p1 = scmp.lt.s32.totalorder %s2360_s8, 1 }
  0x6b   : > { %s2389_s8 = smov (!%p619_p1, %s2360_s8), 1 }
  0x6c   : > { %s1216_s19 = sshll.u32 %s2389_s8, 3  ;;  %p1218_p3 = scmp.ne.s32.totalorder %s2363_s10, 0 }
  0x6d   : > { %s622_s12 = scalar_lea.vmem %s2361_s14, %s1216_s19  ;;  %s2207_s20 = scalar_lea.vmem %s2362_s0, %s1216_s19 }
  0x6e   : > { %633 = sbr.rel (%p1218_p3) target bundleno = 1026 (0x402), region = 112  ;;  %s2364_s5 = sld [smem:[#allocation41_spill]] (!%p1218_p3) }
  0x73   : > { %v638_v0 = vld [vmem:[#allocation3 + $0x18] sm:$0xff]  ;;  %v637_v1 = vld [vmem:[#allocation3 + $0x10] sm:$0xff]  ;;  %v636_v2 = vld [vmem:[#allocation3 + $0x8] sm:$0xff]  ;;  %vm643_vm0 = vcmask 261120   ;;  %v1913_v37 = vmov -1.0   ;;  %v1914_v44 = vmov 32.0  }
  0x74   : > { %659 = vmatpush.msra.mxu0 %v638_v0  ;;  %v635_v3 = vld [vmem:[#allocation3] sm:$0xff]  ;;  %v748_v57 = vld [vmem:[#allocation11 + $0x10] sm:$0xff]  ;;  %v747_v58 = vld [vmem:[#allocation11 + $0x8] sm:$0xff]  ;;  %vm819_vm15 = vcmask 523264  }
  0x75   : > { %v634_v4 = vld [vmem:[%s622_s12] sm:$0xff]  ;;  %v746_v59 = vld [vmem:[#allocation11] sm:$0xff] }
  0x76   : > { %660 = vmatpush.msra.mxu0 %v637_v1  ;;  %v1466_v5 = vld [vmem:[#allocation6] ss:$0 sm:$0xff] }
  0x77   : > { %v749_v56 = vld [vmem:[#allocation11 + $0x18] sm:$0xff] }
  0x78   : > { %661 = vmatpush.msra.mxu0 %v636_v2  ;;  %769 = vmatpush.msra.mxu1 %v749_v56  ;;  %v1916_v56 = vmov 0.0  }
  0x7a   : > { %662 = vmatpush.msra.mxu0 %v635_v3  ;;  %770 = vmatpush.msra.mxu1 %v748_v57  ;;  %v1917_v57 = vmov 64.0  }
  0x7b   : > { %1219 = vmatmul.msk.f32.vlgmr.msra.gmra.mxu0 %vm643_vm0, %v634_v4 }
  0x7c   : > { %771 = vmatpush.msra.mxu1 %v747_v58 }
  0x7e   : > { %772 = vmatpush.msra.mxu1 %v746_v59 }
  0xf8   : > { %v664_v6 = vpop.f32.mrf.mxu0 }
  0xf9   : > { %v665_v7 = vadd.f32 %v1466_v5, %v664_v6  ;;  %v1467_v5 = vld [vmem:[#allocation8] ss:$0 sm:$0xff] }
  0xfb   : > { %v668_v8 = vmul.f32 0.70710677, %v665_v7  ;;  %v667_v40 = vmul.f32 0.5, %v665_v7 }
  0xfd   : > { %v671_v9 = vand.u32 2147483647, %v668_v8  ;;  %vm669_vm5 = vcmp.ge.f32.partialorder %v668_v8, 0.0  ;;  %v1468_v8 = vld [vmem:[#allocation9] ss:$0 sm:$0xff] }
  0xfe   : > { %v670_v38 = vsel %vm669_vm5, 1.0, %v1913_v37 }
  0xff   : > { %v672_v10 = vmul.f32 0.3275911, %v671_v9  ;;  %v698_v21 = vmul.f32 %v671_v9, %v671_v9 }
 0x101   : > { %v673_v11 = vadd.f32 1.0, %v672_v10  ;;  %v699_v25 = vsub.f32 0.0, %v698_v21 }
 0x103   : > { %1472 = vrcp.f32 %v673_v11  ;;  %v685_v15 = vand.u32 2147483648, %v673_v11  ;;  %v683_v17 = vand.u32 2147483647, %v673_v11  ;;  %vm679_vm2 = vweird.f32 %v673_v11 }
 0x104   : > { %v700_v28 = vmul.f32 1.442695, %v699_v25 }
 0x105   : > { %v686_v19 = vor.u32 1.1754944e-38, %v685_v15  ;;  %vm684_vm4 = vcmp.eq.f32.partialorder %v683_v17, 8.507059e+37 }
 0x106   : > { %1474 = vpow2.f32 %v700_v28 }
 0x107   : > { %1476 = vrcp.f32 %v1914_v44 }
 0x109   : > { %v1473_v12 = vpop.eup %1472 }
 0x10a   : > { %v675_v13 = vmul.f32 %v1473_v12, %v673_v11  ;;  %vm680_vm1 = vweird.f32 %v1473_v12  ;;  %v1915_v11 = vmov 0  }
 0x10b   : > { %vm681_vm3 = vmor %vm679_vm2, %vm680_vm1  ;;  %1464 = vset.pattern.permute.xlu1 %v1915_v11  ;;  %1465 = vset.pattern.permute.xlu0 %v1915_v11 }
 0x10c   : > { %v676_v14 = vsub.f32 1.0, %v675_v13  ;;  %v1475_v34 = vpop.eup %1474  ;;  %v1469_v13 = vld [vmem:[#allocation12] ss:$0 sm:$0xff] }
 0x10d   : > { %v1477_v45 = vpop.eup %1476 }
 0x10e   : > { %v677_v16 = vmul.f32 %v1473_v12, %v676_v14  ;;  %v713_v46 = vmul.f32 32.0, %v1477_v45  ;;  %vm717_vm6 = vweird.f32 %v1477_v45 }
 0x110   : > { %v678_v18 = vadd.f32 %v1473_v12, %v677_v16  ;;  %v714_v47 = vsub.f32 1.0, %v713_v46 }
 0x112   : > { %v682_v20 = vsel %vm681_vm3, %v1473_v12, %v678_v18  ;;  %v715_v48 = vmul.f32 %v1477_v45, %v714_v47  ;;  %v857_v12 = vld [vmem:[%s2207_s20] sm:$0xff] }
 0x113   : > { %v687_v22 = vsel %vm684_vm4, %v686_v19, %v682_v20  ;;  %861 = vperm.xlu1 %1464, %v857_v12  }
 0x114   : > { %v689_v23 = vmul.f32 1.0614054, %v687_v22  ;;  %v716_v49 = vadd.f32 %v1477_v45, %v715_v48 }
 0x116   : > { %v690_v24 = vadd.f32 -1.4531521, %v689_v23  ;;  %v718_v50 = vsel %vm717_vm6, %v1477_v45, %v716_v49  ;;  %vm893_vm6 = vcmask 519168  }
 0x118   : > { %v691_v26 = vmul.f32 %v690_v24, %v687_v22 }
 0x11a   : > { %v692_v27 = vadd.f32 1.4214138, %v691_v26 }
 0x11c   : > { %v693_v29 = vmul.f32 %v692_v27, %v687_v22 }
 0x11e   : > { %v694_v30 = vadd.f32 -0.28449672, %v693_v29 }
 0x120   : > { %v695_v31 = vmul.f32 %v694_v30, %v687_v22 }
 0x122   : > { %v696_v32 = vadd.f32 0.2548296, %v695_v31 }
 0x124   : > { %v697_v33 = vmul.f32 %v696_v32, %v687_v22 }
 0x126   : > { %v702_v35 = vmul.f32 %v1475_v34, %v697_v33 }
 0x128   : > { %v703_v36 = vsub.f32 1.0, %v702_v35 }
 0x12a   : > { %v704_v39 = vmul.f32 %v703_v36, %v670_v38 }
 0x12c   : > { %v705_v41 = vadd.f32 1.0, %v704_v39 }
 0x12e   : > { %v706_v42 = vmul.f32 %v705_v41, %v667_v40 }
 0x130   : > { %v709_v43 = vsel %vm643_vm0, %v706_v42, 0.0 }
 0x131   : > { %710 = vadd.xlane.f32.xlu0 %v709_v43 }
 0x1a4   : > { %v711_v51 = vpop.xlane.xlu0 %710 }
 0x1a5   : > { %v719_v52 = vmul.f32 %v718_v50, %v711_v51 }
 0x1a7   : > { %v720_v53 = vsub.f32 %v706_v42, %v719_v52  ;;  %v866_v52 = vld [vmem:[%s2364_s5] sm:$0xff] }
 0x1a8   : > { %886 = vmatpush.msra.mxu2 %v866_v52 }
 0x1a9   : > { %v721_v54 = vmul.f32 %v720_v53, %v720_v53 }
 0x1ab   : > { %v722_v55 = vsel %vm643_vm0, %v721_v54, 0.0 }
 0x1ac   : > { %723 = vadd.xlane.f32.xlu0 %v722_v55  ;;  %v862_v55 = vpop.permute.xlu1 %861 }
 0x21f   : > { %v724_v60 = vpop.xlane.xlu0 %723 }
 0x220   : > { %v725_v61 = vmul.f32 %v724_v60, %v718_v50 }
 0x222   : > { %v726_v62 = vadd.f32 1e-05, %v725_v61 }
 0x224   : > { %1478 = vrsqrt.f32 %v726_v62  ;;  %vm733_vm8 = vweird.f32 %v726_v62 }
 0x22a   : > { %v1479_v63 = vpop.eup %1478 }
 0x22b   : > { %v728_v0 = vmul.f32 %v1479_v63, %v726_v62  ;;  %vm734_vm7 = vweird.f32 %v1479_v63 }
 0x22c   : > { %vm735_vm9 = vmor %vm733_vm8, %vm734_vm7 }
 0x22d   : > { %v729_v1 = vmul.f32 %v1479_v63, %v728_v0 }
 0x22f   : > { %v730_v2 = vmul.f32 0.5, %v729_v1 }
 0x231   : > { %v731_v3 = vsub.f32 1.5, %v730_v2 }
 0x233   : > { %v732_v4 = vmul.f32 %v1479_v63, %v731_v3 }
 0x235   : > { %v736_v6 = vsel %vm735_vm9, %v1479_v63, %v732_v4 }
 0x236   : > { %v737_v7 = vmul.f32 %v736_v6, %v720_v53  ;;  %v858_v53 = vlaneseq }
 0x238   : > { %v741_v9 = vmul.f32 %v1467_v5, %v737_v7  ;;  %v859_v54 = vand.u32 127, %v858_v53 }
 0x23a   : > { %v745_v10 = vadd.f32 %v1468_v8, %v741_v9  ;;  %vm863_vm1 = vcmp.eq.s32.totalorder %v859_v54, %v862_v55 }
 0x23c   : > { %1220 = vmatmul.msk.f32.vlgmr.msra.gmra.mxu1 %vm643_vm0, %v745_v10  ;;  %vm867_vm0 = vcmask 64512  }
 0x2b9   : > { %v774_v14 = vpop.f32.mrf.mxu1 }
 0x2ba   : > { %v775_v15 = vadd.f32 %v1469_v13, %v774_v14  ;;  %v1470_v14 = vld [vmem:[#allocation14] ss:$0 sm:$0xff] }
 0x2bc   : > { %v778_v16 = vmul.f32 0.70710677, %v775_v15  ;;  %v777_v48 = vmul.f32 0.5, %v775_v15 }
 0x2be   : > { %v781_v17 = vand.u32 2147483647, %v778_v16  ;;  %vm779_vm14 = vcmp.ge.f32.partialorder %v778_v16, 0.0  ;;  %v1471_v16 = vld [vmem:[#allocation15] ss:$0 sm:$0xff] }
 0x2bf   : > { %v780_v46 = vsel %vm779_vm14, 1.0, %v1913_v37  ;;  %v1221_v37 = vsel %vm863_vm1, 1.0, %v1916_v56 }
 0x2c0   : > { %v782_v18 = vmul.f32 0.3275911, %v781_v17  ;;  %v808_v29 = vmul.f32 %v781_v17, %v781_v17  ;;  %1222 = vmatmul.msk.f32.vlgmr.msra.gmra.mxu2 %vm867_vm0, %v1221_v37 }
 0x2c2   : > { %v783_v19 = vadd.f32 1.0, %v782_v18  ;;  %v809_v33 = vsub.f32 0.0, %v808_v29 }
 0x2c4   : > { %1480 = vrcp.f32 %v783_v19  ;;  %v795_v23 = vand.u32 2147483648, %v783_v19  ;;  %v793_v25 = vand.u32 2147483647, %v783_v19  ;;  %vm789_vm11 = vweird.f32 %v783_v19 }
 0x2c5   : > { %v810_v36 = vmul.f32 1.442695, %v809_v33 }
 0x2c6   : > { %v796_v27 = vor.u32 1.1754944e-38, %v795_v23  ;;  %vm794_vm13 = vcmp.eq.f32.partialorder %v793_v25, 8.507059e+37 }
 0x2c7   : > { %1482 = vpow2.f32 %v810_v36 }
 0x2c8   : > { %1484 = vrcp.f32 %v1917_v57 }
 0x2ca   : > { %v1481_v20 = vpop.eup %1480 }
 0x2cb   : > { %v785_v21 = vmul.f32 %v1481_v20, %v783_v19  ;;  %vm790_vm10 = vweird.f32 %v1481_v20 }
 0x2cc   : > { %vm791_vm12 = vmor %vm789_vm11, %vm790_vm10 }
 0x2cd   : > { %v786_v22 = vsub.f32 1.0, %v785_v21  ;;  %v1483_v43 = vpop.eup %1482 }
 0x2ce   : > { %v1485_v58 = vpop.eup %1484 }
 0x2cf   : > { %v787_v24 = vmul.f32 %v1481_v20, %v786_v22  ;;  %v824_v59 = vmul.f32 64.0, %v1485_v58  ;;  %vm828_vm2 = vweird.f32 %v1485_v58 }
 0x2d1   : > { %v788_v26 = vadd.f32 %v1481_v20, %v787_v24  ;;  %v825_v60 = vsub.f32 1.0, %v824_v59 }
 0x2d3   : > { %v792_v28 = vsel %vm791_vm12, %v1481_v20, %v788_v26  ;;  %v826_v61 = vmul.f32 %v1485_v58, %v825_v60 }
 0x2d4   : > { %v797_v30 = vsel %vm794_vm13, %v796_v27, %v792_v28 }
 0x2d5   : > { %v799_v31 = vmul.f32 1.0614054, %v797_v30  ;;  %v827_v62 = vadd.f32 %v1485_v58, %v826_v61 }
 0x2d7   : > { %v800_v32 = vadd.f32 -1.4531521, %v799_v31  ;;  %v829_v63 = vsel %vm828_vm2, %v1485_v58, %v827_v62 }
 0x2d9   : > { %v801_v34 = vmul.f32 %v800_v32, %v797_v30 }
 0x2db   : > { %v802_v35 = vadd.f32 1.4214138, %v801_v34 }
 0x2dd   : > { %v803_v38 = vmul.f32 %v802_v35, %v797_v30 }
 0x2df   : > { %v804_v39 = vadd.f32 -0.28449672, %v803_v38 }
 0x2e1   : > { %v805_v40 = vmul.f32 %v804_v39, %v797_v30 }
 0x2e3   : > { %v806_v41 = vadd.f32 0.2548296, %v805_v40 }
 0x2e5   : > { %v807_v42 = vmul.f32 %v806_v41, %v797_v30 }
 0x2e7   : > { %v812_v44 = vmul.f32 %v1483_v43, %v807_v42 }
 0x2e9   : > { %v813_v45 = vsub.f32 1.0, %v812_v44 }
 0x2eb   : > { %v814_v47 = vmul.f32 %v813_v45, %v780_v46 }
 0x2ed   : > { %v815_v49 = vadd.f32 1.0, %v814_v47 }
 0x2ef   : > { %v816_v50 = vmul.f32 %v815_v49, %v777_v48 }
 0x2f1   : > { %v820_v51 = vsel %vm819_vm15, %v816_v50, 0.0 }
 0x2f2   : > { %821 = vadd.xlane.f32.xlu1 %v820_v51 }
 0x343   : > { %v888_v20 = vpop.f32.mrf.mxu2 }
 0x365   : > { %v822_v0 = vpop.xlane.xlu1 %821 }
 0x366   : > { %v830_v1 = vmul.f32 %v829_v63, %v822_v0 }
 0x368   : > { %v831_v2 = vsub.f32 %v816_v50, %v830_v1 }
 0x36a   : > { %v832_v3 = vmul.f32 %v831_v2, %v831_v2 }
 0x36c   : > { %v833_v4 = vsel %vm819_vm15, %v832_v3, 0.0 }
 0x36d   : > { %834 = vadd.xlane.f32.xlu2 %v833_v4 }
 0x3e0   : > { %v835_v5 = vpop.xlane.xlu2 %834 }
 0x3e1   : > { %v836_v6 = vmul.f32 %v835_v5, %v829_v63 }
 0x3e3   : > { %v837_v7 = vadd.f32 1e-05, %v836_v6 }
 0x3e5   : > { %1486 = vrsqrt.f32 %v837_v7  ;;  %vm844_vm4 = vweird.f32 %v837_v7 }
 0x3eb   : > { %v1487_v8 = vpop.eup %1486 }
 0x3ec   : > { %v839_v9 = vmul.f32 %v1487_v8, %v837_v7  ;;  %vm845_vm3 = vweird.f32 %v1487_v8 }
 0x3ed   : > { %vm846_vm5 = vmor %vm844_vm4, %vm845_vm3 }
 0x3ee   : > { %v840_v10 = vmul.f32 %v1487_v8, %v839_v9 }
 0x3f0   : > { %v841_v11 = vmul.f32 0.5, %v840_v10 }
 0x3f2   : > { %v842_v12 = vsub.f32 1.5, %v841_v11 }
 0x3f4   : > { %v843_v13 = vmul.f32 %v1487_v8, %v842_v12 }
 0x3f6   : > { %v847_v15 = vsel %vm846_vm5, %v1487_v8, %v843_v13 }
 0x3f7   : > { %v848_v17 = vmul.f32 %v847_v15, %v831_v2 }
 0x3f9   : > { %v852_v18 = vmul.f32 %v1470_v14, %v848_v17 }
 0x3fb   : > { %v856_v19 = vadd.f32 %v1471_v16, %v852_v18 }
 0x3fd   : > { %v891_v21 = vsub.f32 %v856_v19, %v888_v20 }
 0x3ff   : > { %v892_v22 = vpack.c.bf16 %v891_v21, %v891_v21 }
 0x401   : > { %894 = vst.msk [vmem:[#allocation2] sm:$0xf] %vm893_vm6, %v892_v22 }
 0x402 PF: > { %v1250_v23 = vld [vmem:[%s2190_s7 + $0x30] sm:$0xf]  ;;  %v1272_v24 = vld [vmem:[%s2190_s7 + $0x34] sm:$0xf0]  ;;  %v1271_v25 = vld [vmem:[%s2190_s7 + $0x34] sm:$0xf] }
 0x403   : > { %v1251_v26 = vor.u32 %v1272_v24, %v1250_v23  ;;  %v1252_v27 = vld [vmem:[%s2190_s7 + $0x38] sm:$0xf0]  ;;  %v1242_v28 = vld [vmem:[%s2190_s7 + $0x20] sm:$0xf]  ;;  %v1270_v29 = vld [vmem:[%s2190_s7 + $0x24] sm:$0xf0] }
 0x404   : > { %v1255_v30 = vor.u32 %v1271_v25, %v1252_v27  ;;  %v1269_v31 = vld [vmem:[%s2190_s7 + $0x24] sm:$0xf]  ;;  %v1244_v32 = vld [vmem:[%s2190_s7 + $0x28] sm:$0xf0]  ;;  %v1243_v33 = vor.u32 %v1270_v29, %v1242_v28  ;;  %v1234_v35 = vld [vmem:[%s2190_s7 + $0x10] sm:$0xf] }
 0x405   : > { %962 = vmatpush.bf16.msra.mxu0 %v1251_v26  ;;  %v1247_v34 = vor.u32 %v1269_v31, %v1244_v32  ;;  %v1268_v36 = vld [vmem:[%s2190_s7 + $0x14] sm:$0xf0]  ;;  %v1267_v38 = vld [vmem:[%s2190_s7 + $0x14] sm:$0xf]  ;;  %v1236_v39 = vld [vmem:[%s2190_s7 + $0x18] sm:$0xf0] }
 0x406   : > { %975 = vmatpush.bf16.msra.mxu1 %v1255_v30  ;;  %v1235_v40 = vor.u32 %v1268_v36, %v1234_v35  ;;  %s2365_s6 = sld [smem:[#allocation27_spill]]  ;;  %v1239_v41 = vor.u32 %v1267_v38, %v1236_v39  ;;  %v1226_v42 = vld [vmem:[%s2190_s7] sm:$0xf]  ;;  %v1266_v43 = vld [vmem:[%s2190_s7 + $0x4] sm:$0xf0]  ;;  %vm954_vm7 = vcmask 523264  }
 0x407   : > { %s2366_s8 = sld [smem:[#allocation28_spill]]  ;;  %v1265_v44 = vld [vmem:[%s2190_s7 + $0x4] sm:$0xf]  ;;  %v1228_v45 = vld [vmem:[%s2190_s7 + $0x8] sm:$0xf0]  ;;  %v1227_v46 = vor.u32 %v1266_v43, %v1226_v42  ;;  %s1002_s5 = sshll.u32 %s2209_s15, 4  ;;  %s1003_s5 = int_to_ptr.vmem [resolvable:$true] %s1002_s5 }
 0x408   : > { %v1231_v47 = vor.u32 %v1265_v44, %v1228_v45  ;;  %v895_v48 = vld [vmem:[#allocation2] sm:$0xf]  ;;  %s2367_s7 = sld [smem:[#allocation43_spill]] }
 0x409   : > { %963 = vmatpush.bf16.msra.mxu0 %v1243_v33  ;;  %s2368_s2 = sld [smem:[#allocation44_spill]] }
 0x40a   : > { %976 = vmatpush.bf16.msra.mxu1 %v1247_v34 }
 0x40c   : > { %s1223_s21 = sshll.u32 %s2365_s6, 8  ;;  %s1259_s19 = sshll.u32 %s2365_s6, 1 }
 0x40d   : > { %964 = vmatpush.bf16.msra.mxu0 %v1235_v40  ;;  %s1260_s23 = sshll.u32 %s2366_s8, 2  ;;  %s905_s3 = sshra.s32 %s1223_s21, 7 }
 0x40e   : > { %977 = vmatpush.bf16.msra.mxu1 %v1239_v41  ;;  %s998_s14 = sadd.s32 %s1260_s23, %s1259_s19  ;;  %s907_s1 = scalar_lea.vmem %s2367_s7, %s905_s3 }
 0x40f   : > { %s1261_s0 = sshll.u32 %s998_s14, 3  ;;  %v908_v49 = vld [vmem:[%s907_s1] sm:$0x3]  ;;  %s987_s8 = scalar_lea.sflag [#allocation5], %s616_s9 }
 0x410   : > { %s1000_s4 = scalar_lea.hbm %s2368_s2, %s1261_s0  ;;  %v910_v50 = vperm.slane %v908_v49, 0  ;;  %v911_v51 = vperm.slane %v908_v49, 1  ;;  %s1778_s14 = scalar_lea.hbm %s2368_s2, 64 }
 0x411   : > { %965 = vmatpush.bf16.msra.mxu0 %v1227_v46  ;;  %s1004_s6 = sshll.u32 %s1000_s4, 4  ;;  %s1005_s6 = int_to_ptr.hbm [resolvable:$true] %s1004_s6 }
 0x412   : > { %978 = vmatpush.bf16.msra.mxu1 %v1231_v47  ;;  %s1772_s21 = sshra.s32 %s1005_s6, 4  ;;  %s1773_s21 = int_to_ptr.hbm [resolvable:$true] %s1772_s21 }
 0x413   : > { %s1774_s19 = scalar_lea.hbm %s1773_s21, 16  ;;  %p1779_p0 = scmp.lt.s32.totalorder %s1773_s21, %s2368_s2 }
 0x414   : > { %1256 = vmatmul.msk.bf16.vlgmr.msra.gmra.mxu0 %vm954_vm7, %v895_v48  ;;  %p1775_p11 = scmp.ne.s32.totalorder %s1773_s21, %s1774_s19  ;;  %p1780_p2 = scmp.lt.s32.totalorder %s1778_s14, %s1774_s19 }
 0x415   : > { %1257 = vmatmul.msk.bf16.vlgmr.msra.gmra.mxu1 %vm954_vm7, %v895_v48 }
 0x416   : > { %p1776_p12 = pnand %p1775_p11, %p2147_p6  ;;  %p1781_p4 = por %p1780_p2, %p1779_p0 }
 0x418   : > { %p1777_p13 = pneg %p1776_p12 }
 0x41a   : > { %p1782_p5 = pnand %p1781_p4, %p1777_p13 }
 0x491   : > { %v967_v52 = vpop.f32.mrf.mxu0 }
 0x492   : > { %v968_v53 = vadd.f32 %v967_v52, %v910_v50  ;;  %v980_v54 = vpop.f32.mrf.mxu1 }
 0x493   : > { %v981_v55 = vadd.f32 %v980_v54, %v911_v51 }
 0x494   : > { %984 = vst [vmem:[%s2209_s15] sm:$0xff] %v968_v53 }
 0x495   : > { %985 = vst [vmem:[%s2209_s15 + $0x8] sm:$0xff] %v981_v55 }
 0x496   : > { %1785 = shalt.err (!%p1782_p5)
}
 0x497   : > { %1307 = dma.vmem_to_hbm [thread:$0]  (%p2147_p6), %s1003_s5, 256, %s1005_s6, %s987_s8  }
 0x499   : > { %v969_v56 = vpop.f32.mrf.mxu0 }
 0x49a   : > { %v982_v37 = vpop.f32.mrf.mxu1 }
 0x49b PF: > { %s2369_s9 = sld [smem:[#allocation26_spill]]  ;;  %p1359_p7 = scmp.ge.s32.totalorder %s1900_s18, 2 }
 0x49d   : > { %p1339_p8 = pnand %p1359_p7, %p2153_p9 }
 0x49f   : > { %p1340_p10 = pneg %p1339_p8 }
 0x4a1   : > { %s1016_s15 = sand.u32 1, %s2369_s9  }
 0x4a2   : > { %s1017_s7 = scalar_lea.sflag [#allocation5], %s1016_s15 }
 0x4a3   : > { %1855 = dma.done.wait (%p1340_p10), %s1017_s7, 256  }
 0x4a4   : > { %1857 = vsyncadd (%p1340_p10), %s1017_s7, 4294967040  ;;  %s31_s18 = sadd.s32 1, %s1900_s18   ;;  %s2370_s11 = smov %s2383_s25 }
 0x4a5   : > { %p28_p1 = scmp.ge.s32.totalorder %s31_s18, 6   ;;  %s2371_s1 = sld [smem:[#allocation30_spill]] }
 0x4a6   : > { %s2372_s25 = smov %s1864_s26  ;;  %s2373_s26 = smov %s1868_s27 }
 0x4a7   : > { %s2374_s27 = smov %s2145_s28  ;;  %s2375_s28 = smov %s1876_s29 }
 0x4a8   : > { %s2376_s29 = smov %s1880_s30  ;;  %s2377_s30 = smov %s2128_s22 }
 0x4a9   : > { %s2378_s14 = smov %s1892_s16  ;;  %s2379_s15 = smov %s1896_s17 }
 0x4aa   : > { %s2380_s16 = smov %s2370_s11  ;;  %30 = sbr.rel (!%p28_p1) target bundleno = 27 (0x1b), region = 159 }
 0x4ab   : > { %s2381_s17 = smov %s2371_s1 }
 0x4af   :  { %1023 = vsyncpa [#allocation4], 1 }
 0x4b0   :  { %1025 = vsyncpa [#allocation4 + $0x1], 1 }
 0x4b1   :  { %1026 = vsyncpa [#allocation7], 1 }
 0x4b2   :  { %1027 = vsyncpa [#allocation10], 1 }
 0x4b3   :  { %1028 = vsyncpa [#allocation13], 1 }
 0x4b4   :  { %1029 = vsyncpa [#allocation16], 1 }
 0x4b5   :  { %1030 = vsyncpa [#allocation5], 1 }
 0x4b6   :  { %1032 = vsyncpa [#allocation5 + $0x1], 1 }

</bundles_post_ra>
